<compile_context>
chip_gen: v7x
topology: tpu7x:2x2x1
jax: 0.10.0
libtpu: 0.0.40
codegen_flags: <defaults>
</compile_context>

<pallas_src>
import numpy as np
import jax
import jax.numpy as jnp
from jax import lax
from jax.experimental import pallas as pl
from jax.experimental.pallas import tpu as pltpu


def _make_bigru_kernel(TT):
    """Fused bidirectional packed-GRU recurrence.

    Grid = (direction, time_block).  The time block index is already reversed
    for the backward direction by the BlockSpec index_map; inside the kernel we
    only reverse the walk order within the block.
    """

    def kernel(gi_r_ref, gi_z_ref, gi_n_ref, mask_ref,
               whh_r_ref, whh_z_ref, whh_n_ref, bhh_n_ref,
               out_ref, hfin_ref, h_scr):
        d = pl.program_id(0)          # 0 = forward, 1 = backward
        k = pl.program_id(1)          # time block (sequential recurrence axis)

        @pl.when(k == 0)
        def _():
            h_scr[...] = jnp.zeros_like(h_scr)

        # weights resident for the whole block (loaded once per grid step)
        whh_r = whh_r_ref[0]          # (H, H)
        whh_z = whh_z_ref[0]
        whh_n = whh_n_ref[0]
        bhh_n = bhh_n_ref[0]          # (1, H)

        def step(i, h):
            # forward walks the block 0..TT-1, backward walks TT-1..0
            t = i + d * (TT - 1 - 2 * i)
            gi_r = gi_r_ref[0, t]     # (B, H)  hoisted x@W_ih (+ b_ih [+ b_hh])
            gi_z = gi_z_ref[0, t]
            gi_n = gi_n_ref[0, t]
            m = mask_ref[t]           # (B, 1)  1.0 inside sequence, else 0.0

            r = jax.nn.sigmoid(gi_r + jnp.dot(h, whh_r,
                                              preferred_element_type=jnp.float32))
            z = jax.nn.sigmoid(gi_z + jnp.dot(h, whh_z,
                                              preferred_element_type=jnp.float32))
            n = jnp.tanh(gi_n + r * (jnp.dot(h, whh_n,
                                             preferred_element_type=jnp.float32)
                                     + bhh_n))
            h_new = (1.0 - z) * n + z * h
            h = m * h_new + (1.0 - m) * h      # packed-seq: stop at each length
            out_ref[0, t] = m * h              # pad_packed pads with zeros
            return h

        h = lax.fori_loop(0, TT, step, h_scr[...], unroll=True)
        h_scr[...] = h

        @pl.when(k == pl.num_programs(1) - 1)  # write final hidden once
        def _():
            hfin_ref[0] = h

    return kernel


def bigru_packed(gi_r, gi_z, gi_n, mask, whh_r, whh_z, whh_n, bhh_n, *, tt):
    _, T_pad, B, H = gi_r.shape
    nblk = T_pad // tt

    # time block index: k for forward, nblk-1-k for backward
    def gi_map(d, k):
        return (d, k + d * (nblk - 1 - 2 * k), 0, 0)

    def mask_map(d, k):
        return (k + d * (nblk - 1 - 2 * k), 0, 0)

    def w_map(d, k):
        return (d, 0, 0)

    out, hfin = pl.pallas_call(
        _make_bigru_kernel(tt),
        out_shape=(jax.ShapeDtypeStruct((2, T_pad, B, H), jnp.float32),
                   jax.ShapeDtypeStruct((2, B, H), jnp.float32)),
        grid=(2, nblk),
        in_specs=[
            pl.BlockSpec((1, tt, B, H), gi_map),    # gi_r
            pl.BlockSpec((1, tt, B, H), gi_map),    # gi_z
            pl.BlockSpec((1, tt, B, H), gi_map),    # gi_n
            pl.BlockSpec((tt, B, 1), mask_map),     # mask (shared by both dirs)
            pl.BlockSpec((1, H, H), w_map),         # W_hh_r
            pl.BlockSpec((1, H, H), w_map),         # W_hh_z
            pl.BlockSpec((1, H, H), w_map),         # W_hh_n
            pl.BlockSpec((1, 1, H), w_map),         # b_hh_n
        ],
        out_specs=(pl.BlockSpec((1, tt, B, H), gi_map),          # time-major out
                   pl.BlockSpec((1, B, H), lambda d, k: (d, 0, 0))),  # final h
        scratch_shapes=[pltpu.VMEM((B, H), jnp.float32)],        # carried hidden
        compiler_params=pltpu.CompilerParams(
            dimension_semantics=("parallel", "arbitrary")),      # dir || , time seq
    )(gi_r, gi_z, gi_n, mask, whh_r, whh_z, whh_n, bhh_n)
    return out, hfin


def init_params(key, vocab_size, hidden_dim):
    H = hidden_dim
    bound = 1.0 / np.sqrt(H)
    keys = jax.random.split(key, 5)
    u = lambda kk, shape: jax.random.uniform(kk, shape, jnp.float32, -bound, bound)

    emb = jax.random.normal(keys[0], (vocab_size, H), jnp.float32)
    emb = emb.at[0].set(0.0)                                    # padding_idx=0

    w_ih = u(keys[1], (2, H, 3 * H))      # (dir, in, gate[r|z|n]*H), pre-transposed
    w_hh_flat = u(keys[2], (2, H, 3 * H))
    # per-gate layout (dir, gate, in, out): no lane-offset slicing inside kernel
    w_hh = jnp.stack([w_hh_flat[:, :, :H],
                      w_hh_flat[:, :, H:2 * H],
                      w_hh_flat[:, :, 2 * H:]], axis=1)
    b_ih = u(keys[3], (2, 3 * H))
    b_hh = u(keys[4], (2, 3 * H))
    return {"embedding": emb, "w_ih": w_ih, "w_hh": w_hh,
            "b_ih": b_ih, "b_hh": b_hh}


def copy_encoder_raw(params, ids, lengths_list, *, tt=8):
    """Forward pass of CopyEncoderRAW.

    ids: (B, T) int32, 0 = padding token.
    lengths_list: python list of ints (sorted descending, as PyTorch requires).
    Returns (lstm_out (B, T_max, 2H), hidden (2, B, H)).
    """
    H = params["w_hh"].shape[-1]
    T_max = int(max(lengths_list))               # pad_packed pads to max length
    T_pad = -(-T_max // tt) * tt                 # round up to time-block multiple

    # embedding lookup (plain-JAX glue), padded to T_pad
    x = jnp.take(params["embedding"], ids, axis=0)[:, :T_max]       # (B,T_max,H)
    x = jnp.pad(x, ((0, 0), (0, T_pad - T_max), (0, 0)))            # (B,T_pad,H)

    # Hoisted input projection: one big matmul for ALL steps and BOTH directions.
    # b_ih (all gates) and b_hh (r,z gates) are folded in; b_hh_n must stay
    # inside the kernel (it sits under the r * (.) term).
    # TODO(synk): bf16 MXU operands skipped to keep exact f32 parity with the reference.
    w_ih, b_ih, b_hh = params["w_ih"], params["b_ih"], params["b_hh"]
    b_fold = b_ih + jnp.concatenate(
        [b_hh[:, :2 * H], jnp.zeros((2, H), jnp.float32)], axis=1)
    gi = jnp.einsum("bth,dhg->dtbg", x, w_ih,
                    precision=lax.Precision.HIGHEST) + b_fold[:, None, None, :]
    gi_r = gi[..., :H]
    gi_z = gi[..., H:2 * H]
    gi_n = gi[..., 2 * H:]

    # packed-sequence validity mask, streamed with the same time blocking as gi
    lengths = jnp.asarray(lengths_list, jnp.int32)
    mask = (jnp.arange(T_pad)[:, None, None]
            < lengths[None, :, None]).astype(jnp.float32)           # (T_pad,B,1)

    w_hh = params["w_hh"]
    whh_r, whh_z, whh_n = w_hh[:, 0], w_hh[:, 1], w_hh[:, 2]        # (2,H,H) each
    bhh_n = b_hh[:, 2 * H:].reshape(2, 1, H)

    out, hfin = bigru_packed(gi_r, gi_z, gi_n, mask,
                             whh_r, whh_z, whh_n, bhh_n, tt=tt)

    # (2, T_pad, B, H) -> (B, T_max, 2H) batch-first, [fwd | bwd] on last dim
    lstm_out = jnp.concatenate([out[0], out[1]], axis=-1)           # (T_pad,B,2H)
    lstm_out = jnp.transpose(lstm_out, (1, 0, 2))[:, :T_max]        # (B,T_max,2H)
    hidden = hfin                                                   # (2, B, H)
    return lstm_out, hidden


def _bigru_ref(x, lengths, params):
    """Pure-JAX reference (packed bidirectional GRU, PyTorch gate conventions)."""
    B, T, H = x.shape
    hp = lax.Precision.HIGHEST
    w_ih, w_hh, b_ih, b_hh = (params["w_ih"], params["w_hh"],
                              params["b_ih"], params["b_hh"])
    outs, hids = [], []
    for d, order in ((0, range(T)), (1, range(T - 1, -1, -1))):
        h = jnp.zeros((B, H), jnp.float32)
        out_d = [None] * T
        for t in order:
            gi = jnp.dot(x[:, t], w_ih[d], precision=hp) + b_ih[d]
            gh_r = jnp.dot(h, w_hh[d, 0], precision=hp) + b_hh[d, :H]
            gh_z = jnp.dot(h, w_hh[d, 1], precision=hp) + b_hh[d, H:2 * H]
            gh_n = jnp.dot(h, w_hh[d, 2], precision=hp) + b_hh[d, 2 * H:]
            r = jax.nn.sigmoid(gi[:, :H] + gh_r)
            z = jax.nn.sigmoid(gi[:, H:2 * H] + gh_z)
            n = jnp.tanh(gi[:, 2 * H:] + r * gh_n)
            h_new = (1.0 - z) * n + z * h
            m = (t < lengths)[:, None]
            h = jnp.where(m, h_new, h)
            out_d[t] = jnp.where(m, h, 0.0)
        outs.append(jnp.stack(out_d, axis=1))   # (B, T, H)
        hids.append(h)
    return jnp.concatenate(outs, axis=-1), jnp.stack(hids, axis=0)


if __name__ == "__main__":
    HIDDEN_DIM = 32
    VOCAB_SIZE = 50
    B, T = 2, 8
    lengths_list = [8, 5]                        # sorted descending, as required

    key = jax.random.PRNGKey(0)
    pkey, idkey = jax.random.split(key)
    params = init_params(pkey, VOCAB_SIZE, HIDDEN_DIM)

    ids = jax.random.randint(idkey, (B, T), 1, VOCAB_SIZE, dtype=jnp.int32)
    pos = jnp.arange(T)[None, :]
    len_arr = jnp.asarray(lengths_list)[:, None]
    ids = jnp.where(pos < len_arr, ids, 0)       # pad with token 0

    lstm_out, hidden = copy_encoder_raw(params, ids, lengths_list)
    jax.block_until_ready((lstm_out, hidden))

    # correctness check against pure-JAX packed-GRU reference
    T_max = max(lengths_list)
    x_emb = jnp.take(params["embedding"], ids, axis=0)[:, :T_max]
    ref_out, ref_hid = _bigru_ref(x_emb, jnp.asarray(lengths_list, jnp.int32),
                                  params)
    np.testing.assert_allclose(np.asarray(lstm_out), np.asarray(ref_out),
                               rtol=2e-3, atol=2e-3)
    np.testing.assert_allclose(np.asarray(hidden), np.asarray(ref_hid),
                               rtol=2e-3, atol=2e-3)

    assert lstm_out.shape == (B, T_max, 2 * HIDDEN_DIM)
    assert hidden.shape == (2, B, HIDDEN_DIM)
    print("KERNEL_OK")
</pallas_src>

<mosaic_0001>
module attributes {stable_mosaic.version = 11 : i64} {
  func.func @kernel(%arg0: i32, %arg1: i32, %arg2: memref<1x8x2x32xf32, #tpu.memory_space<vmem>>, %arg3: memref<1x8x2x32xf32, #tpu.memory_space<vmem>>, %arg4: memref<1x8x2x32xf32, #tpu.memory_space<vmem>>, %arg5: memref<8x2x1xf32, #tpu.memory_space<vmem>>, %arg6: memref<1x32x32xf32, #tpu.memory_space<vmem>>, %arg7: memref<1x32x32xf32, #tpu.memory_space<vmem>>, %arg8: memref<1x32x32xf32, #tpu.memory_space<vmem>>, %arg9: memref<1x1x32xf32, #tpu.memory_space<vmem>>, %arg10: memref<1x8x2x32xf32, #tpu.memory_space<vmem>>, %arg11: memref<1x2x32xf32, #tpu.memory_space<vmem>>, %arg12: memref<2x32xf32, #tpu.memory_space<vmem>>) attributes {dimension_semantics = [#tpu.dimension_semantics<parallel>, #tpu.dimension_semantics<arbitrary>], iteration_bounds = array<i64: 2, 1>, scalar_prefetch = 0 : i64, scratch_operands = 1 : i64, tpu.core_type = #tpu.core_type<tc>, window_params = [{transform_indices = @transform_0, window_bounds = array<i64: 1, 8, 2, 32>}, {transform_indices = @transform_1, window_bounds = array<i64: 1, 8, 2, 32>}, {transform_indices = @transform_2, window_bounds = array<i64: 1, 8, 2, 32>}, {transform_indices = @transform_3, window_bounds = array<i64: 8, 2, 1>}, {transform_indices = @transform_4, window_bounds = array<i64: 1, 32, 32>}, {transform_indices = @transform_5, window_bounds = array<i64: 1, 32, 32>}, {transform_indices = @transform_6, window_bounds = array<i64: 1, 32, 32>}, {transform_indices = @transform_7, window_bounds = array<i64: 1, 1, 32>}, {transform_indices = @transform_8, window_bounds = array<i64: 1, 8, 2, 32>}, {transform_indices = @transform_9, window_bounds = array<i64: 1, 2, 32>}]} {
    %c0_i32 = arith.constant 0 : i32
    %0 = arith.cmpi eq, %arg1, %c0_i32 : i32
    %1 = arith.extui %0 : i1 to i32
    %c0_i32_0 = arith.constant 0 : i32
    %2 = arith.cmpi ne, %1, %c0_i32_0 : i32
    scf.if %2 {
      %cst_202 = arith.constant 0.000000e+00 : f32
      %448 = vector.broadcast %cst_202 : f32 to vector<2x32xf32>
      %c0_203 = arith.constant 0 : index
      %c0_204 = arith.constant 0 : index
      %449 = vector.load %arg12[%c0_203, %c0_204] : memref<2x32xf32, #tpu.memory_space<vmem>>, vector<2x32xf32>
      tpu.vector_store %arg12[%c0_203, %c0_204], %448 {strides = array<i32>} : memref<2x32xf32, #tpu.memory_space<vmem>>, vector<2x32xf32>,
    } else {
    }
    %c0 = arith.constant 0 : index
    %c0_1 = arith.constant 0 : index
    %c0_2 = arith.constant 0 : index
    %3 = vector.load %arg6[%c0, %c0_1, %c0_2] : memref<1x32x32xf32, #tpu.memory_space<vmem>>, vector<1x32x32xf32>
    %4 = vector.shape_cast %3 : vector<1x32x32xf32> to vector<32x32xf32>
    %c0_3 = arith.constant 0 : index
    %c0_4 = arith.constant 0 : index
    %c0_5 = arith.constant 0 : index
    %5 = vector.load %arg7[%c0_3, %c0_4, %c0_5] : memref<1x32x32xf32, #tpu.memory_space<vmem>>, vector<1x32x32xf32>
    %6 = vector.shape_cast %5 : vector<1x32x32xf32> to vector<32x32xf32>
    %c0_6 = arith.constant 0 : index
    %c0_7 = arith.constant 0 : index
    %c0_8 = arith.constant 0 : index
    %7 = vector.load %arg8[%c0_6, %c0_7, %c0_8] : memref<1x32x32xf32, #tpu.memory_space<vmem>>, vector<1x32x32xf32>
    %8 = vector.shape_cast %7 : vector<1x32x32xf32> to vector<32x32xf32>
    %c0_9 = arith.constant 0 : index
    %c0_10 = arith.constant 0 : index
    %c0_11 = arith.constant 0 : index
    %9 = vector.load %arg9[%c0_9, %c0_10, %c0_11] : memref<1x1x32xf32, #tpu.memory_space<vmem>>, vector<1x1x32xf32>
    %10 = vector.shape_cast %9 : vector<1x1x32xf32> to vector<1x32xf32>
    %c0_12 = arith.constant 0 : index
    %c0_13 = arith.constant 0 : index
    %11 = vector.load %arg12[%c0_12, %c0_13] : memref<2x32xf32, #tpu.memory_space<vmem>>, vector<2x32xf32>
    %c0_i32_14 = arith.constant 0 : i32
    %c2_i32 = arith.constant 2 : i32
    %12 = arith.muli %c2_i32, %c0_i32_14 : i32
    %c7_i32 = arith.constant 7 : i32
    %13 = arith.subi %c7_i32, %12 : i32
    %14 = arith.muli %arg0, %13 : i32
    %15 = arith.addi %c0_i32_14, %14 : i32
    %c0_15 = arith.constant 0 : index
    %16 = arith.index_cast %15 : i32 to index
    %c0_16 = arith.constant 0 : index
    %c0_17 = arith.constant 0 : index
    %17 = vector.load %arg2[%c0_15, %16, %c0_16, %c0_17] : memref<1x8x2x32xf32, #tpu.memory_space<vmem>>, vector<1x1x2x32xf32>
    %18 = vector.shape_cast %17 : vector<1x1x2x32xf32> to vector<2x32xf32>
    %c0_18 = arith.constant 0 : index
    %19 = arith.index_cast %15 : i32 to index
    %c0_19 = arith.constant 0 : index
    %c0_20 = arith.constant 0 : index
    %20 = vector.load %arg3[%c0_18, %19, %c0_19, %c0_20] : memref<1x8x2x32xf32, #tpu.memory_space<vmem>>, vector<1x1x2x32xf32>
    %21 = vector.shape_cast %20 : vector<1x1x2x32xf32> to vector<2x32xf32>
    %c0_21 = arith.constant 0 : index
    %22 = arith.index_cast %15 : i32 to index
    %c0_22 = arith.constant 0 : index
    %c0_23 = arith.constant 0 : index
    %23 = vector.load %arg4[%c0_21, %22, %c0_22, %c0_23] : memref<1x8x2x32xf32, #tpu.memory_space<vmem>>, vector<1x1x2x32xf32>
    %24 = vector.shape_cast %23 : vector<1x1x2x32xf32> to vector<2x32xf32>
    %25 = arith.index_cast %15 : i32 to index
    %c0_24 = arith.constant 0 : index
    %c0_25 = arith.constant 0 : index
    %26 = vector.load %arg5[%25, %c0_24, %c0_25] : memref<8x2x1xf32, #tpu.memory_space<vmem>>, vector<1x2x1xf32>
    %27 = vector.shape_cast %26 : vector<1x2x1xf32> to vector<2x1xf32>
    %cst = arith.constant dense<0.000000e+00> : vector<2x32xf32>
    %28 = tpu.matmul %11, %4, %cst {dimension_numbers = #tpu.dot_dimension_numbers<[1], [0], [0], [1], [0, 0, 1, 1], [], []>} : vector<2x32xf32>, vector<32x32xf32>, vector<2x32xf32> -> vector<2x32xf32>
    %29 = arith.addf %18, %28 : vector<2x32xf32>
    %30 = arith.negf %29 : vector<2x32xf32>
    %31 = math.exp %30 : vector<2x32xf32>
    %cst_26 = arith.constant 1.000000e+00 : f32
    %32 = vector.broadcast %cst_26 : f32 to vector<2x32xf32>
    %33 = arith.addf %32, %31 : vector<2x32xf32>
    %34 = arith.divf %32, %33 : vector<2x32xf32>
    %cst_27 = arith.constant dense<0.000000e+00> : vector<2x32xf32>
    %35 = tpu.matmul %11, %6, %cst_27 {dimension_numbers = #tpu.dot_dimension_numbers<[1], [0], [0], [1], [0, 0, 1, 1], [], []>} : vector<2x32xf32>, vector<32x32xf32>, vector<2x32xf32> -> vector<2x32xf32>
    %36 = arith.addf %21, %35 : vector<2x32xf32>
    %37 = arith.negf %36 : vector<2x32xf32>
    %38 = math.exp %37 : vector<2x32xf32>
    %cst_28 = arith.constant 1.000000e+00 : f32
    %39 = vector.broadcast %cst_28 : f32 to vector<2x32xf32>
    %40 = arith.addf %39, %38 : vector<2x32xf32>
    %41 = arith.divf %39, %40 : vector<2x32xf32>
    %cst_29 = arith.constant dense<0.000000e+00> : vector<2x32xf32>
    %42 = tpu.matmul %11, %8, %cst_29 {dimension_numbers = #tpu.dot_dimension_numbers<[1], [0], [0], [1], [0, 0, 1, 1], [], []>} : vector<2x32xf32>, vector<32x32xf32>, vector<2x32xf32> -> vector<2x32xf32>
    %43 = vector.broadcast %10 : vector<1x32xf32> to vector<2x32xf32>
    %44 = arith.addf %42, %43 : vector<2x32xf32>
    %45 = arith.mulf %34, %44 : vector<2x32xf32>
    %46 = arith.addf %24, %45 : vector<2x32xf32>
    %47 = math.tanh %46 : vector<2x32xf32>
    %cst_30 = arith.constant 1.000000e+00 : f32
    %48 = vector.broadcast %cst_30 : f32 to vector<2x32xf32>
    %49 = arith.subf %48, %41 : vector<2x32xf32>
    %50 = arith.mulf %49, %47 : vector<2x32xf32>
    %51 = arith.mulf %41, %11 : vector<2x32xf32>
    %52 = arith.addf %50, %51 : vector<2x32xf32>
    %53 = vector.broadcast %27 : vector<2x1xf32> to vector<2x32xf32>
    %54 = arith.mulf %53, %52 : vector<2x32xf32>
    %cst_31 = arith.constant 1.000000e+00 : f32
    %55 = vector.broadcast %cst_31 : f32 to vector<2x1xf32>
    %56 = arith.subf %55, %27 : vector<2x1xf32>
    %57 = vector.broadcast %56 : vector<2x1xf32> to vector<2x32xf32>
    %58 = arith.mulf %57, %11 : vector<2x32xf32>
    %59 = arith.addf %54, %58 : vector<2x32xf32>
    %60 = vector.broadcast %27 : vector<2x1xf32> to vector<2x32xf32>
    %61 = arith.mulf %60, %59 : vector<2x32xf32>
    %c0_32 = arith.constant 0 : index
    %62 = arith.index_cast %15 : i32 to index
    %c0_33 = arith.constant 0 : index
    %c0_34 = arith.constant 0 : index
    %63 = vector.load %arg10[%c0_32, %62, %c0_33, %c0_34] : memref<1x8x2x32xf32, #tpu.memory_space<vmem>>, vector<1x1x2x32xf32>
    %64 = vector.shape_cast %63 : vector<1x1x2x32xf32> to vector<2x32xf32>
    %65 = vector.shape_cast %61 : vector<2x32xf32> to vector<1x1x2x32xf32>
    tpu.vector_store %arg10[%c0_32, %62, %c0_33, %c0_34], %65 {strides = array<i32>} : memref<1x8x2x32xf32, #tpu.memory_space<vmem>>, vector<1x1x2x32xf32>,
    %c1_i32 = arith.constant 1 : i32
    %c2_i32_35 = arith.constant 2 : i32
    %66 = arith.muli %c2_i32_35, %c1_i32 : i32
    %c7_i32_36 = arith.constant 7 : i32
    %67 = arith.subi %c7_i32_36, %66 : i32
    %68 = arith.muli %arg0, %67 : i32
    %69 = arith.addi %c1_i32, %68 : i32
    %c0_37 = arith.constant 0 : index
    %70 = arith.index_cast %69 : i32 to index
    %c0_38 = arith.constant 0 : index
    %c0_39 = arith.constant 0 : index
    %71 = vector.load %arg2[%c0_37, %70, %c0_38, %c0_39] : memref<1x8x2x32xf32, #tpu.memory_space<vmem>>, vector<1x1x2x32xf32>
    %72 = vector.shape_cast %71 : vector<1x1x2x32xf32> to vector<2x32xf32>
    %c0_40 = arith.constant 0 : index
    %73 = arith.index_cast %69 : i32 to index
    %c0_41 = arith.constant 0 : index
    %c0_42 = arith.constant 0 : index
    %74 = vector.load %arg3[%c0_40, %73, %c0_41, %c0_42] : memref<1x8x2x32xf32, #tpu.memory_space<vmem>>, vector<1x1x2x32xf32>
    %75 = vector.shape_cast %74 : vector<1x1x2x32xf32> to vector<2x32xf32>
    %c0_43 = arith.constant 0 : index
    %76 = arith.index_cast %69 : i32 to index
    %c0_44 = arith.constant 0 : index
    %c0_45 = arith.constant 0 : index
    %77 = vector.load %arg4[%c0_43, %76, %c0_44, %c0_45] : memref<1x8x2x32xf32, #tpu.memory_space<vmem>>, vector<1x1x2x32xf32>
    %78 = vector.shape_cast %77 : vector<1x1x2x32xf32> to vector<2x32xf32>
    %79 = arith.index_cast %69 : i32 to index
    %c0_46 = arith.constant 0 : index
    %c0_47 = arith.constant 0 : index
    %80 = vector.load %arg5[%79, %c0_46, %c0_47] : memref<8x2x1xf32, #tpu.memory_space<vmem>>, vector<1x2x1xf32>
    %81 = vector.shape_cast %80 : vector<1x2x1xf32> to vector<2x1xf32>
    %cst_48 = arith.constant dense<0.000000e+00> : vector<2x32xf32>
    %82 = tpu.matmul %59, %4, %cst_48 {dimension_numbers = #tpu.dot_dimension_numbers<[1], [0], [0], [1], [0, 0, 1, 1], [], []>} : vector<2x32xf32>, vector<32x32xf32>, vector<2x32xf32> -> vector<2x32xf32>
    %83 = arith.addf %72, %82 : vector<2x32xf32>
    %84 = arith.negf %83 : vector<2x32xf32>
    %85 = math.exp %84 : vector<2x32xf32>
    %cst_49 = arith.constant 1.000000e+00 : f32
    %86 = vector.broadcast %cst_49 : f32 to vector<2x32xf32>
    %87 = arith.addf %86, %85 : vector<2x32xf32>
    %88 = arith.divf %86, %87 : vector<2x32xf32>
    %cst_50 = arith.constant dense<0.000000e+00> : vector<2x32xf32>
    %89 = tpu.matmul %59, %6, %cst_50 {dimension_numbers = #tpu.dot_dimension_numbers<[1], [0], [0], [1], [0, 0, 1, 1], [], []>} : vector<2x32xf32>, vector<32x32xf32>, vector<2x32xf32> -> vector<2x32xf32>
    %90 = arith.addf %75, %89 : vector<2x32xf32>
    %91 = arith.negf %90 : vector<2x32xf32>
    %92 = math.exp %91 : vector<2x32xf32>
    %cst_51 = arith.constant 1.000000e+00 : f32
    %93 = vector.broadcast %cst_51 : f32 to vector<2x32xf32>
    %94 = arith.addf %93, %92 : vector<2x32xf32>
    %95 = arith.divf %93, %94 : vector<2x32xf32>
    %cst_52 = arith.constant dense<0.000000e+00> : vector<2x32xf32>
    %96 = tpu.matmul %59, %8, %cst_52 {dimension_numbers = #tpu.dot_dimension_numbers<[1], [0], [0], [1], [0, 0, 1, 1], [], []>} : vector<2x32xf32>, vector<32x32xf32>, vector<2x32xf32> -> vector<2x32xf32>
    %97 = vector.broadcast %10 : vector<1x32xf32> to vector<2x32xf32>
    %98 = arith.addf %96, %97 : vector<2x32xf32>
    %99 = arith.mulf %88, %98 : vector<2x32xf32>
    %100 = arith.addf %78, %99 : vector<2x32xf32>
    %101 = math.tanh %100 : vector<2x32xf32>
    %cst_53 = arith.constant 1.000000e+00 : f32
    %102 = vector.broadcast %cst_53 : f32 to vector<2x32xf32>
    %103 = arith.subf %102, %95 : vector<2x32xf32>
    %104 = arith.mulf %103, %101 : vector<2x32xf32>
    %105 = arith.mulf %95, %59 : vector<2x32xf32>
    %106 = arith.addf %104, %105 : vector<2x32xf32>
    %107 = vector.broadcast %81 : vector<2x1xf32> to vector<2x32xf32>
    %108 = arith.mulf %107, %106 : vector<2x32xf32>
    %cst_54 = arith.constant 1.000000e+00 : f32
    %109 = vector.broadcast %cst_54 : f32 to vector<2x1xf32>
    %110 = arith.subf %109, %81 : vector<2x1xf32>
    %111 = vector.broadcast %110 : vector<2x1xf32> to vector<2x32xf32>
    %112 = arith.mulf %111, %59 : vector<2x32xf32>
    %113 = arith.addf %108, %112 : vector<2x32xf32>
    %114 = vector.broadcast %81 : vector<2x1xf32> to vector<2x32xf32>
    %115 = arith.mulf %114, %113 : vector<2x32xf32>
    %c0_55 = arith.constant 0 : index
    %116 = arith.index_cast %69 : i32 to index
    %c0_56 = arith.constant 0 : index
    %c0_57 = arith.constant 0 : index
    %117 = vector.load %arg10[%c0_55, %116, %c0_56, %c0_57] : memref<1x8x2x32xf32, #tpu.memory_space<vmem>>, vector<1x1x2x32xf32>
    %118 = vector.shape_cast %117 : vector<1x1x2x32xf32> to vector<2x32xf32>
    %119 = vector.shape_cast %115 : vector<2x32xf32> to vector<1x1x2x32xf32>
    tpu.vector_store %arg10[%c0_55, %116, %c0_56, %c0_57], %119 {strides = array<i32>} : memref<1x8x2x32xf32, #tpu.memory_space<vmem>>, vector<1x1x2x32xf32>,
    %c2_i32_58 = arith.constant 2 : i32
    %c2_i32_59 = arith.constant 2 : i32
    %120 = arith.muli %c2_i32_59, %c2_i32_58 : i32
    %c7_i32_60 = arith.constant 7 : i32
    %121 = arith.subi %c7_i32_60, %120 : i32
    %122 = arith.muli %arg0, %121 : i32
    %123 = arith.addi %c2_i32_58, %122 : i32
    %c0_61 = arith.constant 0 : index
    %124 = arith.index_cast %123 : i32 to index
    %c0_62 = arith.constant 0 : index
    %c0_63 = arith.constant 0 : index
    %125 = vector.load %arg2[%c0_61, %124, %c0_62, %c0_63] : memref<1x8x2x32xf32, #tpu.memory_space<vmem>>, vector<1x1x2x32xf32>
    %126 = vector.shape_cast %125 : vector<1x1x2x32xf32> to vector<2x32xf32>
    %c0_64 = arith.constant 0 : index
    %127 = arith.index_cast %123 : i32 to index
    %c0_65 = arith.constant 0 : index
    %c0_66 = arith.constant 0 : index
    %128 = vector.load %arg3[%c0_64, %127, %c0_65, %c0_66] : memref<1x8x2x32xf32, #tpu.memory_space<vmem>>, vector<1x1x2x32xf32>
    %129 = vector.shape_cast %128 : vector<1x1x2x32xf32> to vector<2x32xf32>
    %c0_67 = arith.constant 0 : index
    %130 = arith.index_cast %123 : i32 to index
    %c0_68 = arith.constant 0 : index
    %c0_69 = arith.constant 0 : index
    %131 = vector.load %arg4[%c0_67, %130, %c0_68, %c0_69] : memref<1x8x2x32xf32, #tpu.memory_space<vmem>>, vector<1x1x2x32xf32>
    %132 = vector.shape_cast %131 : vector<1x1x2x32xf32> to vector<2x32xf32>
    %133 = arith.index_cast %123 : i32 to index
    %c0_70 = arith.constant 0 : index
    %c0_71 = arith.constant 0 : index
    %134 = vector.load %arg5[%133, %c0_70, %c0_71] : memref<8x2x1xf32, #tpu.memory_space<vmem>>, vector<1x2x1xf32>
    %135 = vector.shape_cast %134 : vector<1x2x1xf32> to vector<2x1xf32>
    %cst_72 = arith.constant dense<0.000000e+00> : vector<2x32xf32>
    %136 = tpu.matmul %113, %4, %cst_72 {dimension_numbers = #tpu.dot_dimension_numbers<[1], [0], [0], [1], [0, 0, 1, 1], [], []>} : vector<2x32xf32>, vector<32x32xf32>, vector<2x32xf32> -> vector<2x32xf32>
    %137 = arith.addf %126, %136 : vector<2x32xf32>
    %138 = arith.negf %137 : vector<2x32xf32>
    %139 = math.exp %138 : vector<2x32xf32>
    %cst_73 = arith.constant 1.000000e+00 : f32
    %140 = vector.broadcast %cst_73 : f32 to vector<2x32xf32>
    %141 = arith.addf %140, %139 : vector<2x32xf32>
    %142 = arith.divf %140, %141 : vector<2x32xf32>
    %cst_74 = arith.constant dense<0.000000e+00> : vector<2x32xf32>
    %143 = tpu.matmul %113, %6, %cst_74 {dimension_numbers = #tpu.dot_dimension_numbers<[1], [0], [0], [1], [0, 0, 1, 1], [], []>} : vector<2x32xf32>, vector<32x32xf32>, vector<2x32xf32> -> vector<2x32xf32>
    %144 = arith.addf %129, %143 : vector<2x32xf32>
    %145 = arith.negf %144 : vector<2x32xf32>
    %146 = math.exp %145 : vector<2x32xf32>
    %cst_75 = arith.constant 1.000000e+00 : f32
    %147 = vector.broadcast %cst_75 : f32 to vector<2x32xf32>
    %148 = arith.addf %147, %146 : vector<2x32xf32>
    %149 = arith.divf %147, %148 : vector<2x32xf32>
    %cst_76 = arith.constant dense<0.000000e+00> : vector<2x32xf32>
    %150 = tpu.matmul %113, %8, %cst_76 {dimension_numbers = #tpu.dot_dimension_numbers<[1], [0], [0], [1], [0, 0, 1, 1], [], []>} : vector<2x32xf32>, vector<32x32xf32>, vector<2x32xf32> -> vector<2x32xf32>
    %151 = vector.broadcast %10 : vector<1x32xf32> to vector<2x32xf32>
    %152 = arith.addf %150, %151 : vector<2x32xf32>
    %153 = arith.mulf %142, %152 : vector<2x32xf32>
    %154 = arith.addf %132, %153 : vector<2x32xf32>
    %155 = math.tanh %154 : vector<2x32xf32>
    %cst_77 = arith.constant 1.000000e+00 : f32
    %156 = vector.broadcast %cst_77 : f32 to vector<2x32xf32>
    %157 = arith.subf %156, %149 : vector<2x32xf32>
    %158 = arith.mulf %157, %155 : vector<2x32xf32>
    %159 = arith.mulf %149, %113 : vector<2x32xf32>
    %160 = arith.addf %158, %159 : vector<2x32xf32>
    %161 = vector.broadcast %135 : vector<2x1xf32> to vector<2x32xf32>
    %162 = arith.mulf %161, %160 : vector<2x32xf32>
    %cst_78 = arith.constant 1.000000e+00 : f32
    %163 = vector.broadcast %cst_78 : f32 to vector<2x1xf32>
    %164 = arith.subf %163, %135 : vector<2x1xf32>
    %165 = vector.broadcast %164 : vector<2x1xf32> to vector<2x32xf32>
    %166 = arith.mulf %165, %113 : vector<2x32xf32>
    %167 = arith.addf %162, %166 : vector<2x32xf32>
    %168 = vector.broadcast %135 : vector<2x1xf32> to vector<2x32xf32>
    %169 = arith.mulf %168, %167 : vector<2x32xf32>
    %c0_79 = arith.constant 0 : index
    %170 = arith.index_cast %123 : i32 to index
    %c0_80 = arith.constant 0 : index
    %c0_81 = arith.constant 0 : index
    %171 = vector.load %arg10[%c0_79, %170, %c0_80, %c0_81] : memref<1x8x2x32xf32, #tpu.memory_space<vmem>>, vector<1x1x2x32xf32>
    %172 = vector.shape_cast %171 : vector<1x1x2x32xf32> to vector<2x32xf32>
    %173 = vector.shape_cast %169 : vector<2x32xf32> to vector<1x1x2x32xf32>
    tpu.vector_store %arg10[%c0_79, %170, %c0_80, %c0_81], %173 {strides = array<i32>} : memref<1x8x2x32xf32, #tpu.memory_space<vmem>>, vector<1x1x2x32xf32>,
    %c3_i32 = arith.constant 3 : i32
    %c2_i32_82 = arith.constant 2 : i32
    %174 = arith.muli %c2_i32_82, %c3_i32 : i32
    %c7_i32_83 = arith.constant 7 : i32
    %175 = arith.subi %c7_i32_83, %174 : i32
    %176 = arith.muli %arg0, %175 : i32
    %177 = arith.addi %c3_i32, %176 : i32
    %c0_84 = arith.constant 0 : index
    %178 = arith.index_cast %177 : i32 to index
    %c0_85 = arith.constant 0 : index
    %c0_86 = arith.constant 0 : index
    %179 = vector.load %arg2[%c0_84, %178, %c0_85, %c0_86] : memref<1x8x2x32xf32, #tpu.memory_space<vmem>>, vector<1x1x2x32xf32>
    %180 = vector.shape_cast %179 : vector<1x1x2x32xf32> to vector<2x32xf32>
    %c0_87 = arith.constant 0 : index
    %181 = arith.index_cast %177 : i32 to index
    %c0_88 = arith.constant 0 : index
    %c0_89 = arith.constant 0 : index
    %182 = vector.load %arg3[%c0_87, %181, %c0_88, %c0_89] : memref<1x8x2x32xf32, #tpu.memory_space<vmem>>, vector<1x1x2x32xf32>
    %183 = vector.shape_cast %182 : vector<1x1x2x32xf32> to vector<2x32xf32>
    %c0_90 = arith.constant 0 : index
    %184 = arith.index_cast %177 : i32 to index
    %c0_91 = arith.constant 0 : index
    %c0_92 = arith.constant 0 : index
    %185 = vector.load %arg4[%c0_90, %184, %c0_91, %c0_92] : memref<1x8x2x32xf32, #tpu.memory_space<vmem>>, vector<1x1x2x32xf32>
    %186 = vector.shape_cast %185 : vector<1x1x2x32xf32> to vector<2x32xf32>
    %187 = arith.index_cast %177 : i32 to index
    %c0_93 = arith.constant 0 : index
    %c0_94 = arith.constant 0 : index
    %188 = vector.load %arg5[%187, %c0_93, %c0_94] : memref<8x2x1xf32, #tpu.memory_space<vmem>>, vector<1x2x1xf32>
    %189 = vector.shape_cast %188 : vector<1x2x1xf32> to vector<2x1xf32>
    %cst_95 = arith.constant dense<0.000000e+00> : vector<2x32xf32>
    %190 = tpu.matmul %167, %4, %cst_95 {dimension_numbers = #tpu.dot_dimension_numbers<[1], [0], [0], [1], [0, 0, 1, 1], [], []>} : vector<2x32xf32>, vector<32x32xf32>, vector<2x32xf32> -> vector<2x32xf32>
    %191 = arith.addf %180, %190 : vector<2x32xf32>
    %192 = arith.negf %191 : vector<2x32xf32>
    %193 = math.exp %192 : vector<2x32xf32>
    %cst_96 = arith.constant 1.000000e+00 : f32
    %194 = vector.broadcast %cst_96 : f32 to vector<2x32xf32>
    %195 = arith.addf %194, %193 : vector<2x32xf32>
    %196 = arith.divf %194, %195 : vector<2x32xf32>
    %cst_97 = arith.constant dense<0.000000e+00> : vector<2x32xf32>
    %197 = tpu.matmul %167, %6, %cst_97 {dimension_numbers = #tpu.dot_dimension_numbers<[1], [0], [0], [1], [0, 0, 1, 1], [], []>} : vector<2x32xf32>, vector<32x32xf32>, vector<2x32xf32> -> vector<2x32xf32>
    %198 = arith.addf %183, %197 : vector<2x32xf32>
    %199 = arith.negf %198 : vector<2x32xf32>
    %200 = math.exp %199 : vector<2x32xf32>
    %cst_98 = arith.constant 1.000000e+00 : f32
    %201 = vector.broadcast %cst_98 : f32 to vector<2x32xf32>
    %202 = arith.addf %201, %200 : vector<2x32xf32>
    %203 = arith.divf %201, %202 : vector<2x32xf32>
    %cst_99 = arith.constant dense<0.000000e+00> : vector<2x32xf32>
    %204 = tpu.matmul %167, %8, %cst_99 {dimension_numbers = #tpu.dot_dimension_numbers<[1], [0], [0], [1], [0, 0, 1, 1], [], []>} : vector<2x32xf32>, vector<32x32xf32>, vector<2x32xf32> -> vector<2x32xf32>
    %205 = vector.broadcast %10 : vector<1x32xf32> to vector<2x32xf32>
    %206 = arith.addf %204, %205 : vector<2x32xf32>
    %207 = arith.mulf %196, %206 : vector<2x32xf32>
    %208 = arith.addf %186, %207 : vector<2x32xf32>
    %209 = math.tanh %208 : vector<2x32xf32>
    %cst_100 = arith.constant 1.000000e+00 : f32
    %210 = vector.broadcast %cst_100 : f32 to vector<2x32xf32>
    %211 = arith.subf %210, %203 : vector<2x32xf32>
    %212 = arith.mulf %211, %209 : vector<2x32xf32>
    %213 = arith.mulf %203, %167 : vector<2x32xf32>
    %214 = arith.addf %212, %213 : vector<2x32xf32>
    %215 = vector.broadcast %189 : vector<2x1xf32> to vector<2x32xf32>
    %216 = arith.mulf %215, %214 : vector<2x32xf32>
    %cst_101 = arith.constant 1.000000e+00 : f32
    %217 = vector.broadcast %cst_101 : f32 to vector<2x1xf32>
    %218 = arith.subf %217, %189 : vector<2x1xf32>
    %219 = vector.broadcast %218 : vector<2x1xf32> to vector<2x32xf32>
    %220 = arith.mulf %219, %167 : vector<2x32xf32>
    %221 = arith.addf %216, %220 : vector<2x32xf32>
    %222 = vector.broadcast %189 : vector<2x1xf32> to vector<2x32xf32>
    %223 = arith.mulf %222, %221 : vector<2x32xf32>
    %c0_102 = arith.constant 0 : index
    %224 = arith.index_cast %177 : i32 to index
    %c0_103 = arith.constant 0 : index
    %c0_104 = arith.constant 0 : index
    %225 = vector.load %arg10[%c0_102, %224, %c0_103, %c0_104] : memref<1x8x2x32xf32, #tpu.memory_space<vmem>>, vector<1x1x2x32xf32>
    %226 = vector.shape_cast %225 : vector<1x1x2x32xf32> to vector<2x32xf32>
    %227 = vector.shape_cast %223 : vector<2x32xf32> to vector<1x1x2x32xf32>
    tpu.vector_store %arg10[%c0_102, %224, %c0_103, %c0_104], %227 {strides = array<i32>} : memref<1x8x2x32xf32, #tpu.memory_space<vmem>>, vector<1x1x2x32xf32>,
    %c4_i32 = arith.constant 4 : i32
    %c2_i32_105 = arith.constant 2 : i32
    %228 = arith.muli %c2_i32_105, %c4_i32 : i32
    %c7_i32_106 = arith.constant 7 : i32
    %229 = arith.subi %c7_i32_106, %228 : i32
    %230 = arith.muli %arg0, %229 : i32
    %231 = arith.addi %c4_i32, %230 : i32
    %c0_107 = arith.constant 0 : index
    %232 = arith.index_cast %231 : i32 to index
    %c0_108 = arith.constant 0 : index
    %c0_109 = arith.constant 0 : index
    %233 = vector.load %arg2[%c0_107, %232, %c0_108, %c0_109] : memref<1x8x2x32xf32, #tpu.memory_space<vmem>>, vector<1x1x2x32xf32>
    %234 = vector.shape_cast %233 : vector<1x1x2x32xf32> to vector<2x32xf32>
    %c0_110 = arith.constant 0 : index
    %235 = arith.index_cast %231 : i32 to index
    %c0_111 = arith.constant 0 : index
    %c0_112 = arith.constant 0 : index
    %236 = vector.load %arg3[%c0_110, %235, %c0_111, %c0_112] : memref<1x8x2x32xf32, #tpu.memory_space<vmem>>, vector<1x1x2x32xf32>
    %237 = vector.shape_cast %236 : vector<1x1x2x32xf32> to vector<2x32xf32>
    %c0_113 = arith.constant 0 : index
    %238 = arith.index_cast %231 : i32 to index
    %c0_114 = arith.constant 0 : index
    %c0_115 = arith.constant 0 : index
    %239 = vector.load %arg4[%c0_113, %238, %c0_114, %c0_115] : memref<1x8x2x32xf32, #tpu.memory_space<vmem>>, vector<1x1x2x32xf32>
    %240 = vector.shape_cast %239 : vector<1x1x2x32xf32> to vector<2x32xf32>
    %241 = arith.index_cast %231 : i32 to index
    %c0_116 = arith.constant 0 : index
    %c0_117 = arith.constant 0 : index
    %242 = vector.load %arg5[%241, %c0_116, %c0_117] : memref<8x2x1xf32, #tpu.memory_space<vmem>>, vector<1x2x1xf32>
    %243 = vector.shape_cast %242 : vector<1x2x1xf32> to vector<2x1xf32>
    %cst_118 = arith.constant dense<0.000000e+00> : vector<2x32xf32>
    %244 = tpu.matmul %221, %4, %cst_118 {dimension_numbers = #tpu.dot_dimension_numbers<[1], [0], [0], [1], [0, 0, 1, 1], [], []>} : vector<2x32xf32>, vector<32x32xf32>, vector<2x32xf32> -> vector<2x32xf32>
    %245 = arith.addf %234, %244 : vector<2x32xf32>
    %246 = arith.negf %245 : vector<2x32xf32>
    %247 = math.exp %246 : vector<2x32xf32>
    %cst_119 = arith.constant 1.000000e+00 : f32
    %248 = vector.broadcast %cst_119 : f32 to vector<2x32xf32>
    %249 = arith.addf %248, %247 : vector<2x32xf32>
    %250 = arith.divf %248, %249 : vector<2x32xf32>
    %cst_120 = arith.constant dense<0.000000e+00> : vector<2x32xf32>
    %251 = tpu.matmul %221, %6, %cst_120 {dimension_numbers = #tpu.dot_dimension_numbers<[1], [0], [0], [1], [0, 0, 1, 1], [], []>} : vector<2x32xf32>, vector<32x32xf32>, vector<2x32xf32> -> vector<2x32xf32>
    %252 = arith.addf %237, %251 : vector<2x32xf32>
    %253 = arith.negf %252 : vector<2x32xf32>
    %254 = math.exp %253 : vector<2x32xf32>
    %cst_121 = arith.constant 1.000000e+00 : f32
    %255 = vector.broadcast %cst_121 : f32 to vector<2x32xf32>
    %256 = arith.addf %255, %254 : vector<2x32xf32>
    %257 = arith.divf %255, %256 : vector<2x32xf32>
    %cst_122 = arith.constant dense<0.000000e+00> : vector<2x32xf32>
    %258 = tpu.matmul %221, %8, %cst_122 {dimension_numbers = #tpu.dot_dimension_numbers<[1], [0], [0], [1], [0, 0, 1, 1], [], []>} : vector<2x32xf32>, vector<32x32xf32>, vector<2x32xf32> -> vector<2x32xf32>
    %259 = vector.broadcast %10 : vector<1x32xf32> to vector<2x32xf32>
    %260 = arith.addf %258, %259 : vector<2x32xf32>
    %261 = arith.mulf %250, %260 : vector<2x32xf32>
    %262 = arith.addf %240, %261 : vector<2x32xf32>
    %263 = math.tanh %262 : vector<2x32xf32>
    %cst_123 = arith.constant 1.000000e+00 : f32
    %264 = vector.broadcast %cst_123 : f32 to vector<2x32xf32>
    %265 = arith.subf %264, %257 : vector<2x32xf32>
    %266 = arith.mulf %265, %263 : vector<2x32xf32>
    %267 = arith.mulf %257, %221 : vector<2x32xf32>
    %268 = arith.addf %266, %267 : vector<2x32xf32>
    %269 = vector.broadcast %243 : vector<2x1xf32> to vector<2x32xf32>
    %270 = arith.mulf %269, %268 : vector<2x32xf32>
    %cst_124 = arith.constant 1.000000e+00 : f32
    %271 = vector.broadcast %cst_124 : f32 to vector<2x1xf32>
    %272 = arith.subf %271, %243 : vector<2x1xf32>
    %273 = vector.broadcast %272 : vector<2x1xf32> to vector<2x32xf32>
    %274 = arith.mulf %273, %221 : vector<2x32xf32>
    %275 = arith.addf %270, %274 : vector<2x32xf32>
    %276 = vector.broadcast %243 : vector<2x1xf32> to vector<2x32xf32>
    %277 = arith.mulf %276, %275 : vector<2x32xf32>
    %c0_125 = arith.constant 0 : index
    %278 = arith.index_cast %231 : i32 to index
    %c0_126 = arith.constant 0 : index
    %c0_127 = arith.constant 0 : index
    %279 = vector.load %arg10[%c0_125, %278, %c0_126, %c0_127] : memref<1x8x2x32xf32, #tpu.memory_space<vmem>>, vector<1x1x2x32xf32>
    %280 = vector.shape_cast %279 : vector<1x1x2x32xf32> to vector<2x32xf32>
    %281 = vector.shape_cast %277 : vector<2x32xf32> to vector<1x1x2x32xf32>
    tpu.vector_store %arg10[%c0_125, %278, %c0_126, %c0_127], %281 {strides = array<i32>} : memref<1x8x2x32xf32, #tpu.memory_space<vmem>>, vector<1x1x2x32xf32>,
    %c5_i32 = arith.constant 5 : i32
    %c2_i32_128 = arith.constant 2 : i32
    %282 = arith.muli %c2_i32_128, %c5_i32 : i32
    %c7_i32_129 = arith.constant 7 : i32
    %283 = arith.subi %c7_i32_129, %282 : i32
    %284 = arith.muli %arg0, %283 : i32
    %285 = arith.addi %c5_i32, %284 : i32
    %c0_130 = arith.constant 0 : index
    %286 = arith.index_cast %285 : i32 to index
    %c0_131 = arith.constant 0 : index
    %c0_132 = arith.constant 0 : index
    %287 = vector.load %arg2[%c0_130, %286, %c0_131, %c0_132] : memref<1x8x2x32xf32, #tpu.memory_space<vmem>>, vector<1x1x2x32xf32>
    %288 = vector.shape_cast %287 : vector<1x1x2x32xf32> to vector<2x32xf32>
    %c0_133 = arith.constant 0 : index
    %289 = arith.index_cast %285 : i32 to index
    %c0_134 = arith.constant 0 : index
    %c0_135 = arith.constant 0 : index
    %290 = vector.load %arg3[%c0_133, %289, %c0_134, %c0_135] : memref<1x8x2x32xf32, #tpu.memory_space<vmem>>, vector<1x1x2x32xf32>
    %291 = vector.shape_cast %290 : vector<1x1x2x32xf32> to vector<2x32xf32>
    %c0_136 = arith.constant 0 : index
    %292 = arith.index_cast %285 : i32 to index
    %c0_137 = arith.constant 0 : index
    %c0_138 = arith.constant 0 : index
    %293 = vector.load %arg4[%c0_136, %292, %c0_137, %c0_138] : memref<1x8x2x32xf32, #tpu.memory_space<vmem>>, vector<1x1x2x32xf32>
    %294 = vector.shape_cast %293 : vector<1x1x2x32xf32> to vector<2x32xf32>
    %295 = arith.index_cast %285 : i32 to index
    %c0_139 = arith.constant 0 : index
    %c0_140 = arith.constant 0 : index
    %296 = vector.load %arg5[%295, %c0_139, %c0_140] : memref<8x2x1xf32, #tpu.memory_space<vmem>>, vector<1x2x1xf32>
    %297 = vector.shape_cast %296 : vector<1x2x1xf32> to vector<2x1xf32>
    %cst_141 = arith.constant dense<0.000000e+00> : vector<2x32xf32>
    %298 = tpu.matmul %275, %4, %cst_141 {dimension_numbers = #tpu.dot_dimension_numbers<[1], [0], [0], [1], [0, 0, 1, 1], [], []>} : vector<2x32xf32>, vector<32x32xf32>, vector<2x32xf32> -> vector<2x32xf32>
    %299 = arith.addf %288, %298 : vector<2x32xf32>
    %300 = arith.negf %299 : vector<2x32xf32>
    %301 = math.exp %300 : vector<2x32xf32>
    %cst_142 = arith.constant 1.000000e+00 : f32
    %302 = vector.broadcast %cst_142 : f32 to vector<2x32xf32>
    %303 = arith.addf %302, %301 : vector<2x32xf32>
    %304 = arith.divf %302, %303 : vector<2x32xf32>
    %cst_143 = arith.constant dense<0.000000e+00> : vector<2x32xf32>
    %305 = tpu.matmul %275, %6, %cst_143 {dimension_numbers = #tpu.dot_dimension_numbers<[1], [0], [0], [1], [0, 0, 1, 1], [], []>} : vector<2x32xf32>, vector<32x32xf32>, vector<2x32xf32> -> vector<2x32xf32>
    %306 = arith.addf %291, %305 : vector<2x32xf32>
    %307 = arith.negf %306 : vector<2x32xf32>
    %308 = math.exp %307 : vector<2x32xf32>
    %cst_144 = arith.constant 1.000000e+00 : f32
    %309 = vector.broadcast %cst_144 : f32 to vector<2x32xf32>
    %310 = arith.addf %309, %308 : vector<2x32xf32>
    %311 = arith.divf %309, %310 : vector<2x32xf32>
    %cst_145 = arith.constant dense<0.000000e+00> : vector<2x32xf32>
    %312 = tpu.matmul %275, %8, %cst_145 {dimension_numbers = #tpu.dot_dimension_numbers<[1], [0], [0], [1], [0, 0, 1, 1], [], []>} : vector<2x32xf32>, vector<32x32xf32>, vector<2x32xf32> -> vector<2x32xf32>
    %313 = vector.broadcast %10 : vector<1x32xf32> to vector<2x32xf32>
    %314 = arith.addf %312, %313 : vector<2x32xf32>
    %315 = arith.mulf %304, %314 : vector<2x32xf32>
    %316 = arith.addf %294, %315 : vector<2x32xf32>
    %317 = math.tanh %316 : vector<2x32xf32>
    %cst_146 = arith.constant 1.000000e+00 : f32
    %318 = vector.broadcast %cst_146 : f32 to vector<2x32xf32>
    %319 = arith.subf %318, %311 : vector<2x32xf32>
    %320 = arith.mulf %319, %317 : vector<2x32xf32>
    %321 = arith.mulf %311, %275 : vector<2x32xf32>
    %322 = arith.addf %320, %321 : vector<2x32xf32>
    %323 = vector.broadcast %297 : vector<2x1xf32> to vector<2x32xf32>
    %324 = arith.mulf %323, %322 : vector<2x32xf32>
    %cst_147 = arith.constant 1.000000e+00 : f32
    %325 = vector.broadcast %cst_147 : f32 to vector<2x1xf32>
    %326 = arith.subf %325, %297 : vector<2x1xf32>
    %327 = vector.broadcast %326 : vector<2x1xf32> to vector<2x32xf32>
    %328 = arith.mulf %327, %275 : vector<2x32xf32>
    %329 = arith.addf %324, %328 : vector<2x32xf32>
    %330 = vector.broadcast %297 : vector<2x1xf32> to vector<2x32xf32>
    %331 = arith.mulf %330, %329 : vector<2x32xf32>
    %c0_148 = arith.constant 0 : index
    %332 = arith.index_cast %285 : i32 to index
    %c0_149 = arith.constant 0 : index
    %c0_150 = arith.constant 0 : index
    %333 = vector.load %arg10[%c0_148, %332, %c0_149, %c0_150] : memref<1x8x2x32xf32, #tpu.memory_space<vmem>>, vector<1x1x2x32xf32>
    %334 = vector.shape_cast %333 : vector<1x1x2x32xf32> to vector<2x32xf32>
    %335 = vector.shape_cast %331 : vector<2x32xf32> to vector<1x1x2x32xf32>
    tpu.vector_store %arg10[%c0_148, %332, %c0_149, %c0_150], %335 {strides = array<i32>} : memref<1x8x2x32xf32, #tpu.memory_space<vmem>>, vector<1x1x2x32xf32>,
    %c6_i32 = arith.constant 6 : i32
    %c2_i32_151 = arith.constant 2 : i32
    %336 = arith.muli %c2_i32_151, %c6_i32 : i32
    %c7_i32_152 = arith.constant 7 : i32
    %337 = arith.subi %c7_i32_152, %336 : i32
    %338 = arith.muli %arg0, %337 : i32
    %339 = arith.addi %c6_i32, %338 : i32
    %c0_153 = arith.constant 0 : index
    %340 = arith.index_cast %339 : i32 to index
    %c0_154 = arith.constant 0 : index
    %c0_155 = arith.constant 0 : index
    %341 = vector.load %arg2[%c0_153, %340, %c0_154, %c0_155] : memref<1x8x2x32xf32, #tpu.memory_space<vmem>>, vector<1x1x2x32xf32>
    %342 = vector.shape_cast %341 : vector<1x1x2x32xf32> to vector<2x32xf32>
    %c0_156 = arith.constant 0 : index
    %343 = arith.index_cast %339 : i32 to index
    %c0_157 = arith.constant 0 : index
    %c0_158 = arith.constant 0 : index
    %344 = vector.load %arg3[%c0_156, %343, %c0_157, %c0_158] : memref<1x8x2x32xf32, #tpu.memory_space<vmem>>, vector<1x1x2x32xf32>
    %345 = vector.shape_cast %344 : vector<1x1x2x32xf32> to vector<2x32xf32>
    %c0_159 = arith.constant 0 : index
    %346 = arith.index_cast %339 : i32 to index
    %c0_160 = arith.constant 0 : index
    %c0_161 = arith.constant 0 : index
    %347 = vector.load %arg4[%c0_159, %346, %c0_160, %c0_161] : memref<1x8x2x32xf32, #tpu.memory_space<vmem>>, vector<1x1x2x32xf32>
    %348 = vector.shape_cast %347 : vector<1x1x2x32xf32> to vector<2x32xf32>
    %349 = arith.index_cast %339 : i32 to index
    %c0_162 = arith.constant 0 : index
    %c0_163 = arith.constant 0 : index
    %350 = vector.load %arg5[%349, %c0_162, %c0_163] : memref<8x2x1xf32, #tpu.memory_space<vmem>>, vector<1x2x1xf32>
    %351 = vector.shape_cast %350 : vector<1x2x1xf32> to vector<2x1xf32>
    %cst_164 = arith.constant dense<0.000000e+00> : vector<2x32xf32>
    %352 = tpu.matmul %329, %4, %cst_164 {dimension_numbers = #tpu.dot_dimension_numbers<[1], [0], [0], [1], [0, 0, 1, 1], [], []>} : vector<2x32xf32>, vector<32x32xf32>, vector<2x32xf32> -> vector<2x32xf32>
    %353 = arith.addf %342, %352 : vector<2x32xf32>
    %354 = arith.negf %353 : vector<2x32xf32>
    %355 = math.exp %354 : vector<2x32xf32>
    %cst_165 = arith.constant 1.000000e+00 : f32
    %356 = vector.broadcast %cst_165 : f32 to vector<2x32xf32>
    %357 = arith.addf %356, %355 : vector<2x32xf32>
    %358 = arith.divf %356, %357 : vector<2x32xf32>
    %cst_166 = arith.constant dense<0.000000e+00> : vector<2x32xf32>
    %359 = tpu.matmul %329, %6, %cst_166 {dimension_numbers = #tpu.dot_dimension_numbers<[1], [0], [0], [1], [0, 0, 1, 1], [], []>} : vector<2x32xf32>, vector<32x32xf32>, vector<2x32xf32> -> vector<2x32xf32>
    %360 = arith.addf %345, %359 : vector<2x32xf32>
    %361 = arith.negf %360 : vector<2x32xf32>
    %362 = math.exp %361 : vector<2x32xf32>
    %cst_167 = arith.constant 1.000000e+00 : f32
    %363 = vector.broadcast %cst_167 : f32 to vector<2x32xf32>
    %364 = arith.addf %363, %362 : vector<2x32xf32>
    %365 = arith.divf %363, %364 : vector<2x32xf32>
    %cst_168 = arith.constant dense<0.000000e+00> : vector<2x32xf32>
    %366 = tpu.matmul %329, %8, %cst_168 {dimension_numbers = #tpu.dot_dimension_numbers<[1], [0], [0], [1], [0, 0, 1, 1], [], []>} : vector<2x32xf32>, vector<32x32xf32>, vector<2x32xf32> -> vector<2x32xf32>
    %367 = vector.broadcast %10 : vector<1x32xf32> to vector<2x32xf32>
    %368 = arith.addf %366, %367 : vector<2x32xf32>
    %369 = arith.mulf %358, %368 : vector<2x32xf32>
    %370 = arith.addf %348, %369 : vector<2x32xf32>
    %371 = math.tanh %370 : vector<2x32xf32>
    %cst_169 = arith.constant 1.000000e+00 : f32
    %372 = vector.broadcast %cst_169 : f32 to vector<2x32xf32>
    %373 = arith.subf %372, %365 : vector<2x32xf32>
    %374 = arith.mulf %373, %371 : vector<2x32xf32>
    %375 = arith.mulf %365, %329 : vector<2x32xf32>
    %376 = arith.addf %374, %375 : vector<2x32xf32>
    %377 = vector.broadcast %351 : vector<2x1xf32> to vector<2x32xf32>
    %378 = arith.mulf %377, %376 : vector<2x32xf32>
    %cst_170 = arith.constant 1.000000e+00 : f32
    %379 = vector.broadcast %cst_170 : f32 to vector<2x1xf32>
    %380 = arith.subf %379, %351 : vector<2x1xf32>
    %381 = vector.broadcast %380 : vector<2x1xf32> to vector<2x32xf32>
    %382 = arith.mulf %381, %329 : vector<2x32xf32>
    %383 = arith.addf %378, %382 : vector<2x32xf32>
    %384 = vector.broadcast %351 : vector<2x1xf32> to vector<2x32xf32>
    %385 = arith.mulf %384, %383 : vector<2x32xf32>
    %c0_171 = arith.constant 0 : index
    %386 = arith.index_cast %339 : i32 to index
    %c0_172 = arith.constant 0 : index
    %c0_173 = arith.constant 0 : index
    %387 = vector.load %arg10[%c0_171, %386, %c0_172, %c0_173] : memref<1x8x2x32xf32, #tpu.memory_space<vmem>>, vector<1x1x2x32xf32>
    %388 = vector.shape_cast %387 : vector<1x1x2x32xf32> to vector<2x32xf32>
    %389 = vector.shape_cast %385 : vector<2x32xf32> to vector<1x1x2x32xf32>
    tpu.vector_store %arg10[%c0_171, %386, %c0_172, %c0_173], %389 {strides = array<i32>} : memref<1x8x2x32xf32, #tpu.memory_space<vmem>>, vector<1x1x2x32xf32>,
    %c7_i32_174 = arith.constant 7 : i32
    %c2_i32_175 = arith.constant 2 : i32
    %390 = arith.muli %c2_i32_175, %c7_i32_174 : i32
    %c7_i32_176 = arith.constant 7 : i32
    %391 = arith.subi %c7_i32_176, %390 : i32
    %392 = arith.muli %arg0, %391 : i32
    %393 = arith.addi %c7_i32_174, %392 : i32
    %c0_177 = arith.constant 0 : index
    %394 = arith.index_cast %393 : i32 to index
    %c0_178 = arith.constant 0 : index
    %c0_179 = arith.constant 0 : index
    %395 = vector.load %arg2[%c0_177, %394, %c0_178, %c0_179] : memref<1x8x2x32xf32, #tpu.memory_space<vmem>>, vector<1x1x2x32xf32>
    %396 = vector.shape_cast %395 : vector<1x1x2x32xf32> to vector<2x32xf32>
    %c0_180 = arith.constant 0 : index
    %397 = arith.index_cast %393 : i32 to index
    %c0_181 = arith.constant 0 : index
    %c0_182 = arith.constant 0 : index
    %398 = vector.load %arg3[%c0_180, %397, %c0_181, %c0_182] : memref<1x8x2x32xf32, #tpu.memory_space<vmem>>, vector<1x1x2x32xf32>
    %399 = vector.shape_cast %398 : vector<1x1x2x32xf32> to vector<2x32xf32>
    %c0_183 = arith.constant 0 : index
    %400 = arith.index_cast %393 : i32 to index
    %c0_184 = arith.constant 0 : index
    %c0_185 = arith.constant 0 : index
    %401 = vector.load %arg4[%c0_183, %400, %c0_184, %c0_185] : memref<1x8x2x32xf32, #tpu.memory_space<vmem>>, vector<1x1x2x32xf32>
    %402 = vector.shape_cast %401 : vector<1x1x2x32xf32> to vector<2x32xf32>
    %403 = arith.index_cast %393 : i32 to index
    %c0_186 = arith.constant 0 : index
    %c0_187 = arith.constant 0 : index
    %404 = vector.load %arg5[%403, %c0_186, %c0_187] : memref<8x2x1xf32, #tpu.memory_space<vmem>>, vector<1x2x1xf32>
    %405 = vector.shape_cast %404 : vector<1x2x1xf32> to vector<2x1xf32>
    %cst_188 = arith.constant dense<0.000000e+00> : vector<2x32xf32>
    %406 = tpu.matmul %383, %4, %cst_188 {dimension_numbers = #tpu.dot_dimension_numbers<[1], [0], [0], [1], [0, 0, 1, 1], [], []>} : vector<2x32xf32>, vector<32x32xf32>, vector<2x32xf32> -> vector<2x32xf32>
    %407 = arith.addf %396, %406 : vector<2x32xf32>
    %408 = arith.negf %407 : vector<2x32xf32>
    %409 = math.exp %408 : vector<2x32xf32>
    %cst_189 = arith.constant 1.000000e+00 : f32
    %410 = vector.broadcast %cst_189 : f32 to vector<2x32xf32>
    %411 = arith.addf %410, %409 : vector<2x32xf32>
    %412 = arith.divf %410, %411 : vector<2x32xf32>
    %cst_190 = arith.constant dense<0.000000e+00> : vector<2x32xf32>
    %413 = tpu.matmul %383, %6, %cst_190 {dimension_numbers = #tpu.dot_dimension_numbers<[1], [0], [0], [1], [0, 0, 1, 1], [], []>} : vector<2x32xf32>, vector<32x32xf32>, vector<2x32xf32> -> vector<2x32xf32>
    %414 = arith.addf %399, %413 : vector<2x32xf32>
    %415 = arith.negf %414 : vector<2x32xf32>
    %416 = math.exp %415 : vector<2x32xf32>
    %cst_191 = arith.constant 1.000000e+00 : f32
    %417 = vector.broadcast %cst_191 : f32 to vector<2x32xf32>
    %418 = arith.addf %417, %416 : vector<2x32xf32>
    %419 = arith.divf %417, %418 : vector<2x32xf32>
    %cst_192 = arith.constant dense<0.000000e+00> : vector<2x32xf32>
    %420 = tpu.matmul %383, %8, %cst_192 {dimension_numbers = #tpu.dot_dimension_numbers<[1], [0], [0], [1], [0, 0, 1, 1], [], []>} : vector<2x32xf32>, vector<32x32xf32>, vector<2x32xf32> -> vector<2x32xf32>
    %421 = vector.broadcast %10 : vector<1x32xf32> to vector<2x32xf32>
    %422 = arith.addf %420, %421 : vector<2x32xf32>
    %423 = arith.mulf %412, %422 : vector<2x32xf32>
    %424 = arith.addf %402, %423 : vector<2x32xf32>
    %425 = math.tanh %424 : vector<2x32xf32>
    %cst_193 = arith.constant 1.000000e+00 : f32
    %426 = vector.broadcast %cst_193 : f32 to vector<2x32xf32>
    %427 = arith.subf %426, %419 : vector<2x32xf32>
    %428 = arith.mulf %427, %425 : vector<2x32xf32>
    %429 = arith.mulf %419, %383 : vector<2x32xf32>
    %430 = arith.addf %428, %429 : vector<2x32xf32>
    %431 = vector.broadcast %405 : vector<2x1xf32> to vector<2x32xf32>
    %432 = arith.mulf %431, %430 : vector<2x32xf32>
    %cst_194 = arith.constant 1.000000e+00 : f32
    %433 = vector.broadcast %cst_194 : f32 to vector<2x1xf32>
    %434 = arith.subf %433, %405 : vector<2x1xf32>
    %435 = vector.broadcast %434 : vector<2x1xf32> to vector<2x32xf32>
    %436 = arith.mulf %435, %383 : vector<2x32xf32>
    %437 = arith.addf %432, %436 : vector<2x32xf32>
    %438 = vector.broadcast %405 : vector<2x1xf32> to vector<2x32xf32>
    %439 = arith.mulf %438, %437 : vector<2x32xf32>
    %c0_195 = arith.constant 0 : index
    %440 = arith.index_cast %393 : i32 to index
    %c0_196 = arith.constant 0 : index
    %c0_197 = arith.constant 0 : index
    %441 = vector.load %arg10[%c0_195, %440, %c0_196, %c0_197] : memref<1x8x2x32xf32, #tpu.memory_space<vmem>>, vector<1x1x2x32xf32>
    %442 = vector.shape_cast %441 : vector<1x1x2x32xf32> to vector<2x32xf32>
    %443 = vector.shape_cast %439 : vector<2x32xf32> to vector<1x1x2x32xf32>
    tpu.vector_store %arg10[%c0_195, %440, %c0_196, %c0_197], %443 {strides = array<i32>} : memref<1x8x2x32xf32, #tpu.memory_space<vmem>>, vector<1x1x2x32xf32>,
    %c8_i32 = arith.constant 8 : i32
    %c0_198 = arith.constant 0 : index
    %c0_199 = arith.constant 0 : index
    %444 = vector.load %arg12[%c0_198, %c0_199] : memref<2x32xf32, #tpu.memory_space<vmem>>, vector<2x32xf32>
    tpu.vector_store %arg12[%c0_198, %c0_199], %437 {strides = array<i32>} : memref<2x32xf32, #tpu.memory_space<vmem>>, vector<2x32xf32>,
    %c0_i32_200 = arith.constant 0 : i32
    %445 = arith.cmpi eq, %arg1, %c0_i32_200 : i32
    %446 = arith.extui %445 : i1 to i32
    %c0_i32_201 = arith.constant 0 : i32
    %447 = arith.cmpi ne, %446, %c0_i32_201 : i32
    scf.if %447 {
      %c0_202 = arith.constant 0 : index
      %c0_203 = arith.constant 0 : index
      %c0_204 = arith.constant 0 : index
      %448 = vector.load %arg11[%c0_202, %c0_203, %c0_204] : memref<1x2x32xf32, #tpu.memory_space<vmem>>, vector<1x2x32xf32>
      %449 = vector.shape_cast %448 : vector<1x2x32xf32> to vector<2x32xf32>
      %450 = vector.shape_cast %437 : vector<2x32xf32> to vector<1x2x32xf32>
      tpu.vector_store %arg11[%c0_202, %c0_203, %c0_204], %450 {strides = array<i32>} : memref<1x2x32xf32, #tpu.memory_space<vmem>>, vector<1x2x32xf32>,
    } else {
    }
    return
  }
  func.func @transform_0(%arg0: i32, %arg1: i32) -> (i32, i32, i32, i32) {
    %c2_i32 = arith.constant 2 : i32
    %0 = arith.muli %c2_i32, %arg1 : i32
    %c0_i32 = arith.constant 0 : i32
    %1 = arith.subi %c0_i32, %0 : i32
    %2 = arith.muli %arg0, %1 : i32
    %3 = arith.addi %arg1, %2 : i32
    %c0_i32_0 = arith.constant 0 : i32
    %c0_i32_1 = arith.constant 0 : i32
    %c0_i32_2 = arith.constant 0 : i32
    return %arg0, %3, %c0_i32_0, %c0_i32_1 : i32, i32, i32, i32
  }
  func.func @transform_1(%arg0: i32, %arg1: i32) -> (i32, i32, i32, i32) {
    %c2_i32 = arith.constant 2 : i32
    %0 = arith.muli %c2_i32, %arg1 : i32
    %c0_i32 = arith.constant 0 : i32
    %1 = arith.subi %c0_i32, %0 : i32
    %2 = arith.muli %arg0, %1 : i32
    %3 = arith.addi %arg1, %2 : i32
    %c0_i32_0 = arith.constant 0 : i32
    %c0_i32_1 = arith.constant 0 : i32
    %c0_i32_2 = arith.constant 0 : i32
    return %arg0, %3, %c0_i32_0, %c0_i32_1 : i32, i32, i32, i32
  }
  func.func @transform_2(%arg0: i32, %arg1: i32) -> (i32, i32, i32, i32) {
    %c2_i32 = arith.constant 2 : i32
    %0 = arith.muli %c2_i32, %arg1 : i32
    %c0_i32 = arith.constant 0 : i32
    %1 = arith.subi %c0_i32, %0 : i32
    %2 = arith.muli %arg0, %1 : i32
    %3 = arith.addi %arg1, %2 : i32
    %c0_i32_0 = arith.constant 0 : i32
    %c0_i32_1 = arith.constant 0 : i32
    %c0_i32_2 = arith.constant 0 : i32
    return %arg0, %3, %c0_i32_0, %c0_i32_1 : i32, i32, i32, i32
  }
  func.func @transform_3(%arg0: i32, %arg1: i32) -> (i32, i32, i32) {
    %c2_i32 = arith.constant 2 : i32
    %0 = arith.muli %c2_i32, %arg1 : i32
    %c0_i32 = arith.constant 0 : i32
    %1 = arith.subi %c0_i32, %0 : i32
    %2 = arith.muli %arg0, %1 : i32
    %3 = arith.addi %arg1, %2 : i32
    %c0_i32_0 = arith.constant 0 : i32
    %c0_i32_1 = arith.constant 0 : i32
    %c0_i32_2 = arith.constant 0 : i32
    return %3, %c0_i32_0, %c0_i32_1 : i32, i32, i32
  }
  func.func @transform_4(%arg0: i32, %arg1: i32) -> (i32, i32, i32) {
    %c0_i32 = arith.constant 0 : i32
    %c0_i32_0 = arith.constant 0 : i32
    %c0_i32_1 = arith.constant 0 : i32
    return %arg0, %c0_i32, %c0_i32_0 : i32, i32, i32
  }
  func.func @transform_5(%arg0: i32, %arg1: i32) -> (i32, i32, i32) {
    %c0_i32 = arith.constant 0 : i32
    %c0_i32_0 = arith.constant 0 : i32
    %c0_i32_1 = arith.constant 0 : i32
    return %arg0, %c0_i32, %c0_i32_0 : i32, i32, i32
  }
  func.func @transform_6(%arg0: i32, %arg1: i32) -> (i32, i32, i32) {
    %c0_i32 = arith.constant 0 : i32
    %c0_i32_0 = arith.constant 0 : i32
    %c0_i32_1 = arith.constant 0 : i32
    return %arg0, %c0_i32, %c0_i32_0 : i32, i32, i32
  }
  func.func @transform_7(%arg0: i32, %arg1: i32) -> (i32, i32, i32) {
    %c0_i32 = arith.constant 0 : i32
    %c0_i32_0 = arith.constant 0 : i32
    %c0_i32_1 = arith.constant 0 : i32
    return %arg0, %c0_i32, %c0_i32_0 : i32, i32, i32
  }
  func.func @transform_8(%arg0: i32, %arg1: i32) -> (i32, i32, i32, i32) {
    %c2_i32 = arith.constant 2 : i32
    %0 = arith.muli %c2_i32, %arg1 : i32
    %c0_i32 = arith.constant 0 : i32
    %1 = arith.subi %c0_i32, %0 : i32
    %2 = arith.muli %arg0, %1 : i32
    %3 = arith.addi %arg1, %2 : i32
    %c0_i32_0 = arith.constant 0 : i32
    %c0_i32_1 = arith.constant 0 : i32
    %c0_i32_2 = arith.constant 0 : i32
    return %arg0, %3, %c0_i32_0, %c0_i32_1 : i32, i32, i32, i32
  }
  func.func @transform_9(%arg0: i32, %arg1: i32) -> (i32, i32, i32) {
    %c0_i32 = arith.constant 0 : i32
    %c0_i32_0 = arith.constant 0 : i32
    %c0_i32_1 = arith.constant 0 : i32
    return %arg0, %c0_i32, %c0_i32_0 : i32, i32, i32
  }
}

</mosaic_0001>

<bundles_post_ra>
// kernel: tpu_custom_call.1
= control target key start
LH: loop header
LB: loop body
LE: loop exit
PB: predicated region body
PF: predicated region fallthrough
CT: control target
= control target key end

     0   :  { %s5297_s0 = inlined_call_operand.hbm [shape: f32[2,8,2,32], index: 0, kind: input, shape index: {}]   ;;  %s5298_s1 = inlined_call_operand.hbm [shape: f32[2,8,2,32], index: 1, kind: input, shape index: {}]   ;;  %s5299_s2 = inlined_call_operand.hbm [shape: f32[2,8,2,32], index: 2, kind: input, shape index: {}]   ;;  %s5300_s3 = inlined_call_operand.vmem [shape: f32[8,2,1], index: 3, kind: input, shape index: {}]   ;;  %s5301_s4 = inlined_call_operand.hbm [shape: f32[2,32,32], index: 4, kind: input, shape index: {}]   ;;  %s5302_s5 = inlined_call_operand.hbm [shape: f32[2,32,32], index: 5, kind: input, shape index: {}]   ;;  %s5303_s6 = inlined_call_operand.hbm [shape: f32[2,32,32], index: 6, kind: input, shape index: {}]   ;;  %s5304_s7 = inlined_call_operand.vmem [shape: f32[2,1,32], index: 7, kind: input, shape index: {}]   ;;  %s5305_s8 = inlined_call_operand.hbm [shape: f32[2,8,2,32], index: 8, kind: output, shape index: {0}]   ;;  %s5306_s9 = inlined_call_operand.hbm [shape: f32[2,2,32], index: 9, kind: output, shape index: {1}]  }
   0x1   :  { %5327 = sst [smem:[#allocation30_spill]] %s5297_s0 }
   0x2   :  { %5328 = sst [smem:[#allocation31_spill]] %s5298_s1 }
   0x3   :  { %5329 = sst [smem:[#allocation32_spill]] %s5301_s4 }
   0x4   :  { %5330 = sst [smem:[#allocation33_spill]] %s5304_s7 }
   0x5   :  { %5331 = sst [smem:[#allocation34_spill]] %s5305_s8 }
   0x6   :  { %5332 = sst [smem:[#allocation35_spill]] %s5306_s9 }
   0x7   :  { %15 = vsyncpa [#allocation4], 0 }
   0x8   :  { %17 = vsyncpa [#allocation4 + $0x1], 0 }
   0x9   :  { %18 = vsyncpa [#allocation7], 0 }
   0xa   :  { %20 = vsyncpa [#allocation7 + $0x1], 0 }
   0xb   :  { %21 = vsyncpa [#allocation10], 0 }
   0xc   :  { %23 = vsyncpa [#allocation10 + $0x1], 0 }
   0xd   :  { %24 = vsyncpa [#allocation13], 0 }
   0xe   :  { %26 = vsyncpa [#allocation13 + $0x1], 0 }
   0xf   :  { %27 = vsyncpa [#allocation5], 0 }
  0x10   :  { %29 = vsyncpa [#allocation5 + $0x1], 0 }
  0x11   :  { %30 = vsyncpa [#allocation16], 0 }
  0x12   :  { %32 = vsyncpa [#allocation16 + $0x1], 0  ;;  %s4505_s30 = smov 0   ;;  %s4507_s10 = smov 0  }
  0x13   :  { %s4509_s11 = smov 0   ;;  %s4511_s12 = smov 0  }
  0x14   :  { %s4513_s13 = smov 0   ;;  %s4515_s14 = smov 0  }
  0x15 LB: > { %5333 = sst [smem:[#allocation23_spill]] %s4415_s30  ;;  %s4536_s15 = sadd.s32 4294967295, %s4435_s14   ;;  %s4435_s14 = sphi %s4515_s14, %s38_s14   ;;  %s4431_s13 = sphi %s4513_s13, %s5371_s13   ;;  %s4427_s12 = sphi %s4511_s12, %s5370_s12   ;;  %s4423_s11 = sphi %s4509_s11, %s5369_s11   ;;  %s4419_s10 = sphi %s4507_s10, %s5373_s10   ;;  %s4415_s30 = sphi %s4505_s30, %s5372_s30  }
  0x16   : > { %5334 = sst [smem:[#allocation24_spill]] %s4423_s11  ;;  %s3269_s16 = sadd.s32 4294967294, %s4435_s14  }
  0x17   : > { %5335 = sst [smem:[#allocation25_spill]] %s4431_s13  ;;  %s50_s17 = sadd.s32 1, %s4431_s13 }
  0x18   : > { %s67_s18 = sadd.s32 1, %s4423_s11  ;;  %p52_p0 = scmp.ge.s32.totalorder %s50_s17, 2 }
  0x19   : > { %p74_p1 = scmp.ne.s32.totalorder %s4423_s11, %s4419_s10  ;;  %p75_p2 = scmp.eq.s32.totalorder %s4435_s14, 0 }
  0x1a   : > { %p80_p3 = scmp.ne.s32.totalorder %s4419_s10, %s4415_s30  ;;  %s5375_s17 = smov (%p52_p0, %s50_s17), 0 }
  0x1b   : > { %5336 = sst [smem:[#allocation26_spill]] %s5375_s17  ;;  %p4548_p4 = por %p75_p2, %p74_p1 }
  0x1c   : > { %p81_p5 = scmp.eq.s32.totalorder %s4536_s15, 0  ;;  %s62_s20 = ssub.s32 %s4431_s13, %s5375_s17 }
  0x1d   : > { %p324_p6 = scmp.eq.s32.totalorder %s4536_s15, 1  ;;  %p65_p7 = scmp.eq.s32.totalorder %s62_s20, 0 }
  0x1e   : > { %p4556_p8 = por %p81_p5, %p80_p3  ;;  %p330_p10 = scmp.eq.s32.totalorder %s3269_s16, 1 }
  0x1f   : > { %p4560_p9 = por %p324_p6, %p74_p1  ;;  %p3987_p13 = scmp.lt.s32.totalorder %s4435_s14, 2 }
  0x20   : > { %s5338_s21 = scalar_select %p4556_p8, 1, 0 }
  0x21   : > { %s5339_s22 = scalar_select %p4560_p9, 1, 0 }
  0x22   : > { %s4565_s23 = scalar_select %p65_p7, %s4423_s11, %s67_s18  }
  0x23   : > { %5340 = sst [smem:[#allocation27_spill]] %s5339_s22  ;;  %p4567_p11 = por %p330_p10, %p80_p3 }
  0x24   : > { %5341 = sst [smem:[#allocation28_spill]] %s4565_s23  ;;  %s4574_s25 = sand.u32 1, %s4423_s11  }
  0x25   : > { %s5342_s24 = scalar_select %p4567_p11, 1, 0 }
  0x26   : > { %s4577_s26 = sshll.u32 %s4574_s25, 4  ;;  %s4580_s27 = sshll.u32 %s4431_s13, 8 }
  0x27   : > { %5343 = sst [smem:[#allocation29_spill]] %s5342_s24  ;;  %p4584_p0 = pnand %p3987_p13, %p4548_p4 }
  0x28   : > { %s5312_s29 = sand.u32 1, %s4435_s14   ;;  %s5345_s1 = sld [smem:[#allocation31_spill]] }
  0x29   : > { %s407_s17 = scalar_lea.vmem [#allocation6], %s4577_s26  ;;  %s4602_s19 = scalar_lea.sflag [#allocation7], %s5312_s29 }
  0x2a   : > { %s420_s23 = sshll.u32 %s407_s17, 4  ;;  %p4608_p4 = pneg %p4584_p0  ;;  %s4597_s23 = int_to_ptr.vmem [resolvable:$true] %s420_s23 }
  0x2e   : > { %s4593_s20 = scalar_lea.hbm %s5345_s1, %s4580_s27  ;;  %s4134_s24 = scalar_lea.hbm %s5345_s1, 512 }
  0x2f   : > { %s4129_s11 = scalar_lea.hbm %s4593_s20, 256  ;;  %p4135_p7 = scmp.lt.u32.totalorder %s4593_s20, %s5345_s1 }
  0x30   : > { %p4130_p3 = scmp.ne.s32.totalorder %s4593_s20, %s4129_s11  ;;  %p4136_p10 = scmp.lt.u32.totalorder %s4134_s24, %s4129_s11 }
  0x31   : > { %p4138_p12 = scmp.lt.u32.totalorder %s4129_s11, %s4593_s20 }
  0x32   : > { %p4132_p5 = pnand %p4608_p4, %p4130_p3  ;;  %p4137_p13 = por %p4136_p10, %p4135_p7 }
  0x34   : > { %p4133_p6 = pneg %p4132_p5  ;;  %p4139_p1 = por %p4138_p12, %p4137_p13 }
  0x36   : > { %p4140_p2 = pnand %p4139_p1, %p4133_p6 }
  0x38   : > { %4143 = shalt.err (!%p4140_p2)
}
  0x39   : > { %s4144_s29 = scalar_lea.vmem %s4597_s23, 256  ;;  %s4437_s18 = smov [#allocation6]  }
  0x3a   : > { %p4145_p3 = scmp.ne.s32.totalorder %s4597_s23, %s4144_s29  ;;  %s4149_s17 = sshll.u32 %s4437_s18, 4  ;;  %s4150_s17 = int_to_ptr.vmem [resolvable:$false] %s4149_s17 }
  0x3b   : > { %s4151_s8 = scalar_lea.vmem %s4150_s17, 512  ;;  %p4152_p9 = scmp.lt.s32.totalorder %s4597_s23, %s4150_s17 }
  0x3c   : > { %p4147_p5 = pnand %p4145_p3, %p4608_p4  ;;  %p4153_p8 = scmp.lt.s32.totalorder %s4151_s8, %s4144_s29 }
  0x3e   : > { %p4148_p11 = pneg %p4147_p5  ;;  %p4154_p7 = por %p4153_p8, %p4152_p9 }
  0x40   : > { %p4155_p10 = pnand %p4154_p7, %p4148_p11 }
  0x42   : > { %4158 = shalt.err (!%p4155_p10)
}
  0x43   : > { %s5315_s30 = smov 32   ;;  %s5317_s11 = smov 2  }
  0x44   : > { %3967 = dma.hbm_to_vmem [thread:$0]  (!%p4584_p0), %s4593_s20, 256, %s4597_s23, %s4602_s19, %s5315_s30, %s5315_s30, %s5317_s11  }
  0x45   : > { %p5347_p8 = scmp.lt.s32.totalorder %s4435_s14, 3  ;;  %p5348_p9 = scmp.ge.s32.totalorder %s4435_s14, 1 }
  0x46   : > { %s4644_s29 = sshll.u32 %s4574_s25, 5  ;;  %s4647_s18 = sshll.u32 %s4431_s13, 9 }
  0x47   : > { %p4639_p11 = pnand %p5348_p9, %p5347_p8  ;;  %s5350_s4 = sld [smem:[#allocation32_spill]] }
  0x48   : > { %s478_s23 = scalar_lea.vmem [#allocation9], %s4644_s29  ;;  %s5351_s30 = sand.u32 1, %s4435_s14  }
  0x49   : > { %s5349_s24 = scalar_select %p4639_p11, 1, 0 }
  0x4a   : > { %s485_s20 = sshll.u32 %s478_s23, 4  ;;  %s4660_s11 = scalar_lea.sflag [#allocation10], %s5351_s30  ;;  %s4656_s20 = int_to_ptr.vmem [resolvable:$true] %s485_s20 }
  0x4d   : > { %s4653_s1 = scalar_lea.hbm %s5350_s4, %s4647_s18  ;;  %s4164_s8 = scalar_lea.hbm %s5350_s4, 1024 }
  0x4e   : > { %s4159_s9 = scalar_lea.hbm %s4653_s1, 512  ;;  %p4165_p6 = scmp.lt.u32.totalorder %s4653_s1, %s5350_s4 }
  0x4f   : > { %p4160_p12 = scmp.ne.s32.totalorder %s4653_s1, %s4159_s9  ;;  %p4166_p13 = scmp.lt.u32.totalorder %s4164_s8, %s4159_s9 }
  0x50   : > { %p4168_p5 = scmp.lt.u32.totalorder %s4159_s9, %s4653_s1 }
  0x51   : > { %p4162_p1 = pnand %p4160_p12, %p4608_p4  ;;  %p4167_p3 = por %p4166_p13, %p4165_p6 }
  0x53   : > { %p4163_p2 = pneg %p4162_p1  ;;  %p4169_p7 = por %p4168_p5, %p4167_p3 }
  0x55   : > { %p4170_p10 = pnand %p4169_p7, %p4163_p2 }
  0x57   : > { %4173 = shalt.err (!%p4170_p10)
}
  0x58   : > { %s4174_s30 = scalar_lea.vmem %s4656_s20, 512  ;;  %s4440_s13 = smov [#allocation9]  }
  0x59   : > { %p4175_p8 = scmp.ne.s32.totalorder %s4656_s20, %s4174_s30  ;;  %s4179_s23 = sshll.u32 %s4440_s13, 4  ;;  %s4180_s23 = int_to_ptr.vmem [resolvable:$false] %s4179_s23 }
  0x5a   : > { %s4181_s7 = scalar_lea.vmem %s4180_s23, 1024  ;;  %p4182_p1 = scmp.lt.s32.totalorder %s4656_s20, %s4180_s23 }
  0x5b   : > { %p4177_p9 = pnand %p4175_p8, %p4608_p4  ;;  %p4183_p11 = scmp.lt.s32.totalorder %s4181_s7, %s4174_s30 }
  0x5d   : > { %p4178_p12 = pneg %p4177_p9  ;;  %p4184_p6 = por %p4183_p11, %p4182_p1 }
  0x5f   : > { %p4185_p13 = pnand %p4184_p6, %p4178_p12 }
  0x61   : > { %4188 = shalt.err (!%p4185_p13)
}
  0x62   : > { %s5323_s9 = smov 128   ;;  %s5325_s22 = smov 8  }
  0x63   : > { %3973 = dma.hbm_to_vmem [thread:$0]  (!%p4584_p0), %s4653_s1, 512, %s4656_s20, %s4660_s11, %s5323_s9, %s5323_s9, %s5325_s22  }
  0x64   : > { %s5352_s0 = sld [smem:[#allocation30_spill]]  ;;  %s380_s13 = scalar_lea.vmem [#allocation3], %s4577_s26 }
  0x65   : > { %s393_s23 = sshll.u32 %s380_s13, 4  ;;  %s377_s7 = scalar_lea.sflag [#allocation4], %s4574_s25  ;;  %s4694_s23 = int_to_ptr.vmem [resolvable:$true] %s393_s23 }
  0x6a   : > { %s4691_s30 = scalar_lea.hbm %s5352_s0, %s4580_s27  ;;  %s4194_s17 = scalar_lea.hbm %s5352_s0, 512 }
  0x6b   : > { %s4189_s4 = scalar_lea.hbm %s4691_s30, 256  ;;  %p4195_p5 = scmp.lt.u32.totalorder %s4691_s30, %s5352_s0 }
  0x6c   : > { %p4190_p11 = scmp.ne.s32.totalorder %s4691_s30, %s4189_s4  ;;  %p4196_p7 = scmp.lt.u32.totalorder %s4194_s17, %s4189_s4 }
  0x6d   : > { %p4198_p8 = scmp.lt.u32.totalorder %s4189_s4, %s4691_s30 }
  0x6e   : > { %p4192_p2 = pnand %p4190_p11, %p4608_p4  ;;  %p4197_p10 = por %p4196_p7, %p4195_p5 }
  0x70   : > { %p4193_p3 = pneg %p4192_p2  ;;  %p4199_p9 = por %p4198_p8, %p4197_p10 }
  0x72   : > { %p4200_p12 = pnand %p4199_p9, %p4193_p3 }
  0x74   : > { %4203 = shalt.err (!%p4200_p12)
}
  0x75   : > { %s4204_s13 = scalar_lea.vmem %s4694_s23, 256  ;;  %s4443_s1 = smov [#allocation3]  }
  0x76   : > { %p4205_p1 = scmp.ne.s32.totalorder %s4694_s23, %s4204_s13  ;;  %s4209_s20 = sshll.u32 %s4443_s1, 4  ;;  %s4210_s20 = int_to_ptr.vmem [resolvable:$false] %s4209_s20 }
  0x77   : > { %s4211_s9 = scalar_lea.vmem %s4210_s20, 512  ;;  %p4212_p11 = scmp.lt.s32.totalorder %s4694_s23, %s4210_s20 }
  0x78   : > { %p4207_p6 = pnand %p4205_p1, %p4608_p4  ;;  %p4213_p2 = scmp.lt.s32.totalorder %s4211_s9, %s4204_s13 }
  0x7a   : > { %p4208_p13 = pneg %p4207_p6  ;;  %p4214_p5 = por %p4213_p2, %p4212_p11 }
  0x7c   : > { %p4215_p7 = pnand %p4214_p5, %p4208_p13 }
  0x7e   : > { %4218 = shalt.err (!%p4215_p7)
}
  0x7f   : > { %s5353_s4 = smov 2   ;;  %s5354_s17 = smov 32  }
  0x80   : > { %3964 = dma.hbm_to_vmem [thread:$0]  (!%p4584_p0), %s4691_s30, 256, %s4694_s23, %s377_s7, %s5354_s17, %s5354_s17, %s5353_s4  }
  0x81   : > { %s4727_s13 = scalar_lea.hbm %s5299_s2, %s4580_s27  ;;  %s434_s20 = scalar_lea.vmem [#allocation8], %s4577_s26 }
  0x82   : > { %s447_s9 = sshll.u32 %s434_s20, 4  ;;  %s4219_s22 = scalar_lea.hbm %s4727_s13, 256  ;;  %s4730_s9 = int_to_ptr.vmem [resolvable:$true] %s447_s9 }
  0x83   : > { %p4220_p3 = scmp.ne.s32.totalorder %s4727_s13, %s4219_s22  ;;  %s4224_s23 = scalar_lea.hbm %s5299_s2, 512 }
  0x84   : > { %p4225_p9 = scmp.lt.u32.totalorder %s4727_s13, %s5299_s2  ;;  %p4226_p12 = scmp.lt.u32.totalorder %s4224_s23, %s4219_s22 }
  0x85   : > { %p4222_p10 = pnand %p4220_p3, %p4608_p4  ;;  %p4228_p6 = scmp.lt.u32.totalorder %s4219_s22, %s4727_s13 }
  0x86   : > { %p4227_p1 = por %p4226_p12, %p4225_p9 }
  0x87   : > { %p4223_p8 = pneg %p4222_p10 }
  0x88   : > { %p4229_p13 = por %p4228_p6, %p4227_p1 }
  0x8a   : > { %p4230_p11 = pnand %p4229_p13, %p4223_p8 }
  0x8c   : > { %4233 = shalt.err (!%p4230_p11)
}
  0x8d   : > { %s4234_s26 = scalar_lea.vmem %s4730_s9, 256  ;;  %s4444_s0 = smov [#allocation8]  }
  0x8e   : > { %p4235_p2 = scmp.ne.s32.totalorder %s4730_s9, %s4234_s26  ;;  %s4239_s8 = sshll.u32 %s4444_s0, 4  ;;  %s4240_s8 = int_to_ptr.vmem [resolvable:$false] %s4239_s8 }
  0x8f   : > { %s4241_s1 = scalar_lea.vmem %s4240_s8, 512  ;;  %p4242_p3 = scmp.lt.s32.totalorder %s4730_s9, %s4240_s8 }
  0x90   : > { %p4237_p5 = pnand %p4235_p2, %p4608_p4  ;;  %p4243_p10 = scmp.lt.s32.totalorder %s4241_s1, %s4234_s26 }
  0x92   : > { %p4238_p7 = pneg %p4237_p5  ;;  %p4244_p9 = por %p4243_p10, %p4242_p3 }
  0x94   : > { %p4245_p12 = pnand %p4244_p9, %p4238_p7 }
  0x96   : > { %4248 = shalt.err (!%p4245_p12)
}
  0x97   : > { %3970 = dma.hbm_to_vmem [thread:$0]  (!%p4584_p0), %s4727_s13, 256, %s4730_s9, %s4602_s19, %s5354_s17, %s5354_s17, %s5353_s4  }
  0x98   : > { %s4761_s30 = scalar_lea.hbm %s5302_s5, %s4647_s18  ;;  %s499_s23 = scalar_lea.vmem [#allocation11], %s4644_s29 }
  0x99   : > { %s506_s7 = sshll.u32 %s499_s23, 4  ;;  %s4249_s27 = scalar_lea.hbm %s4761_s30, 512  ;;  %s4764_s7 = int_to_ptr.vmem [resolvable:$true] %s506_s7 }
  0x9a   : > { %p4250_p8 = scmp.ne.s32.totalorder %s4761_s30, %s4249_s27  ;;  %s4254_s4 = scalar_lea.hbm %s5302_s5, 1024 }
  0x9b   : > { %p4255_p13 = scmp.lt.u32.totalorder %s4761_s30, %s5302_s5  ;;  %p4256_p11 = scmp.lt.u32.totalorder %s4254_s4, %s4249_s27 }
  0x9c   : > { %p4252_p1 = pnand %p4250_p8, %p4608_p4  ;;  %p4258_p5 = scmp.lt.u32.totalorder %s4249_s27, %s4761_s30 }
  0x9d   : > { %p4257_p2 = por %p4256_p11, %p4255_p13 }
  0x9e   : > { %p4253_p6 = pneg %p4252_p1 }
  0x9f   : > { %p4259_p7 = por %p4258_p5, %p4257_p2 }
  0xa1   : > { %p4260_p3 = pnand %p4259_p7, %p4253_p6 }
  0xa3   : > { %4263 = shalt.err (!%p4260_p3)
}
  0xa4   : > { %s4264_s9 = scalar_lea.vmem %s4764_s7, 512  ;;  %s4445_s0 = smov [#allocation11]  }
  0xa5   : > { %p4265_p10 = scmp.ne.s32.totalorder %s4764_s7, %s4264_s9  ;;  %s4269_s8 = sshll.u32 %s4445_s0, 4  ;;  %s4270_s8 = int_to_ptr.vmem [resolvable:$false] %s4269_s8 }
  0xa6   : > { %s4271_s1 = scalar_lea.vmem %s4270_s8, 1024  ;;  %p4272_p8 = scmp.lt.s32.totalorder %s4764_s7, %s4270_s8 }
  0xa7   : > { %p4267_p9 = pnand %p4265_p10, %p4608_p4  ;;  %p4273_p1 = scmp.lt.s32.totalorder %s4271_s1, %s4264_s9 }
  0xa9   : > { %p4268_p12 = pneg %p4267_p9  ;;  %p4274_p13 = por %p4273_p1, %p4272_p8 }
  0xab   : > { %p4275_p11 = pnand %p4274_p13, %p4268_p12 }
  0xad   : > { %4278 = shalt.err (!%p4275_p11)
}
  0xae   : > { %s5355_s22 = smov 8   ;;  %s5356_s20 = smov 128  }
  0xaf   : > { %3976 = dma.hbm_to_vmem [thread:$0]  (!%p4584_p0), %s4761_s30, 512, %s4764_s7, %s4660_s11, %s5356_s20, %s5356_s20, %s5355_s22  }
  0xb0   : > { %s4795_s26 = scalar_lea.hbm %s5303_s6, %s4647_s18  ;;  %s520_s19 = scalar_lea.vmem [#allocation12], %s4644_s29 }
  0xb1   : > { %s527_s4 = sshll.u32 %s520_s19, 4  ;;  %s517_s17 = scalar_lea.sflag [#allocation13], %s4574_s25  ;;  %s4798_s4 = int_to_ptr.vmem [resolvable:$true] %s527_s4 }
  0xb2   : > { %s4279_s13 = scalar_lea.hbm %s4795_s26, 512  ;;  %s4284_s7 = scalar_lea.hbm %s5303_s6, 1024 }
  0xb3   : > { %p4280_p6 = scmp.ne.s32.totalorder %s4795_s26, %s4279_s13  ;;  %p4285_p7 = scmp.lt.u32.totalorder %s4795_s26, %s5303_s6 }
  0xb4   : > { %p4286_p3 = scmp.lt.u32.totalorder %s4284_s7, %s4279_s13  ;;  %p4288_p9 = scmp.lt.u32.totalorder %s4279_s13, %s4795_s26 }
  0xb5   : > { %p4282_p2 = pnand %p4280_p6, %p4608_p4 }
  0xb6   : > { %p4287_p10 = por %p4286_p3, %p4285_p7 }
  0xb7   : > { %p4283_p5 = pneg %p4282_p2 }
  0xb8   : > { %p4289_p12 = por %p4288_p9, %p4287_p10 }
  0xba   : > { %p4290_p8 = pnand %p4289_p12, %p4283_p5 }
  0xbc   : > { %4293 = shalt.err (!%p4290_p8)
}
  0xbd   : > { %s4294_s29 = scalar_lea.vmem %s4798_s4, 512  ;;  %s4446_s0 = smov [#allocation12]  }
  0xbe   : > { %p4295_p1 = scmp.ne.s32.totalorder %s4798_s4, %s4294_s29  ;;  %s4299_s8 = sshll.u32 %s4446_s0, 4  ;;  %s4300_s8 = int_to_ptr.vmem [resolvable:$false] %s4299_s8 }
  0xbf   : > { %s4301_s1 = scalar_lea.vmem %s4300_s8, 1024  ;;  %p4302_p6 = scmp.lt.s32.totalorder %s4798_s4, %s4300_s8 }
  0xc0   : > { %p4297_p13 = pnand %p4295_p1, %p4608_p4  ;;  %p4303_p2 = scmp.lt.s32.totalorder %s4301_s1, %s4294_s29 }
  0xc2   : > { %p4298_p11 = pneg %p4297_p13  ;;  %p4304_p7 = por %p4303_p2, %p4302_p6 }
  0xc4   : > { %p4305_p3 = pnand %p4304_p7, %p4298_p11 }
  0xc6   : > { %4308 = shalt.err (!%p4305_p3)
}
  0xc7   : > { %3979 = dma.hbm_to_vmem [thread:$0]  (!%p4584_p0), %s4795_s26, 512, %s4798_s4, %s517_s17, %s5356_s20, %s5356_s20, %s5355_s22  }
  0xc8   : > { %p5357_p4 = scmp.ne.s32.totalorder %s5349_s24, 0 }
  0xc9   : > { %s4830_s16 = sand.u32 (!%p5357_p4), 1, %s4419_s10   ;;  %p5358_p5 = scmp.ne.s32.totalorder (!%p5357_p4), %s5338_s21, 0 }
  0xca   : > { %545 = sbr.rel (%p5357_p4) target bundleno = 2372 (0x944), region = 52  ;;  %s4833_s23 = sshll.u32 (!%p5357_p4), %s4830_s16, 4 }
  0xcb   : > { %s548_s28 = scalar_lea.sflag (!%p5357_p4), [#allocation4], %s4830_s16  ;;  %s4837_s27 = scalar_lea.vmem (!%p5357_p4), [#allocation3], %s4833_s23 }
  0xd1   : > { %4390 = dma.done.wait (%p5358_p5), %s548_s28, 256  }
  0xd2   : > { %4392 = vsyncadd (%p5358_p5), %s548_s28, 4294967040  ;;  %s556_s25 = sand.u32 1, %s4536_s15   ;;  %s4845_s22 = scalar_lea.vmem [#allocation6], %s4833_s23 }
  0xd3   : > { %s557_s24 = scalar_lea.sflag [#allocation7], %s556_s25 }
  0xd4   : > { %4394 = dma.done.wait (%p5358_p5), %s557_s24, 512  }
  0xd5   : > { %4396 = vsyncadd (%p5358_p5), %s557_s24, 4294966784  ;;  %s3295_s20 = sshll.u32 %s4830_s16, 5  ;;  %s4853_s26 = scalar_lea.vmem [#allocation8], %s4833_s23 }
  0xd6   : > { %s575_s19 = scalar_lea.sflag [#allocation10], %s556_s25  ;;  %s578_s4 = scalar_lea.vmem [#allocation9], %s3295_s20 }
  0xd7   : > { %4398 = dma.done.wait (%p5358_p5), %s575_s19, 1024  }
  0xd8   : > { %4400 = vsyncadd (%p5358_p5), %s575_s19, 4294966272  ;;  %s587_s15 = scalar_lea.vmem [#allocation11], %s3295_s20  ;;  %s593_s17 = scalar_lea.sflag [#allocation13], %s4830_s16 }
  0xd9   : > { %s4860_s13 = scalar_lea.vmem [#allocation12], %s3295_s20 }
  0xda   : > { %4402 = dma.done.wait (%p5358_p5), %s593_s17, 512  }
  0xdb   : > { %4404 = vsyncadd (%p5358_p5), %s593_s17, 4294966784  ;;  %vm714_vm0 = vcmask 254976   ;;  %v4447_v0 = vmov 0.0|0.0   ;;  %vm4448_vm1 = vmmov 0   ;;  %v4449_v1 = vmov 0.0   ;;  %s4875_s21 = smul.u32 14, %s4427_s12 }
  0xdc   : > { %3801 = vmatprep.subr.bf16.mxu0 %v4447_v0  ;;  %3545 = vmatprep.mubr.msk.f32.mxu0 %vm4448_vm1, %v4449_v1  ;;  %715 = vst.msk [vmem:[#allocation2] sm:$0x3] %vm714_vm0, %v4449_v1  ;;  %v4450_v2 = vmov 0   ;;  %v716_v3 = vld [vmem:[%s578_s4] sm:$0xff]  ;;  %v717_v4 = vld [vmem:[%s578_s4 + $0x8] sm:$0xff]  ;;  %v718_v5 = vld [vmem:[%s578_s4 + $0x10] sm:$0xff] }
  0xdd   : > { %3807 = vmatprep.subr.bf16.mxu1 %v4447_v0  ;;  %3556 = vmatprep.mubr.msk.f32.mxu1 %vm4448_vm1, %v4449_v1  ;;  %v4877_v6 = vpack.c.bf16 %v717_v4, %v716_v3  ;;  %v719_v7 = vld [vmem:[%s578_s4 + $0x18] sm:$0xff]  ;;  %v720_v8 = vld [vmem:[%s587_s15] sm:$0xff]  ;;  %s738_s7 = scalar_lea.vmem %s5300_s3, %s4875_s21  ;;  %v721_v9 = vld [vmem:[%s587_s15 + $0x8] sm:$0xff]  ;;  %s4889_s18 = smul.u32 6, %s4427_s12  ;;  %vm740_vm2 = vcmask 261120  }
  0xde   : > { %4047 = vset.pattern.permute.xlu0 %v4450_v2  ;;  %4048 = vset.pattern.permute.xlu1 %v4450_v2  ;;  %v722_v10 = vld [vmem:[%s587_s15 + $0x10] sm:$0xff]  ;;  %v723_v11 = vld [vmem:[%s587_s15 + $0x18] sm:$0xff]  ;;  %v4884_v12 = vpack.c.bf16 %v719_v7, %v718_v5  ;;  %v4886_v13 = vpack.c.bf16 %v721_v9, %v720_v8  ;;  %v724_v14 = vld [vmem:[%s4860_s13] sm:$0xff]  ;;  %s4908_s8 = smul.u32 10, %s4427_s12  ;;  %s4914_s1 = sshll.u32 %s4427_s12, 1 }
  0xdf   : > { %3803 = vmatpush3.bf16.msra.mxu0 %v4877_v6  ;;  %v725_v15 = vld [vmem:[%s4860_s13 + $0x8] sm:$0xff]  ;;  %v739_v16 = vld [vmem:[%s738_s7] sm:$0x3]  ;;  %v4895_v17 = vpack.c.bf16 %v723_v11, %v722_v10  ;;  %s3059_s0 = scalar_lea.vmem %s5300_s3, %s4889_s18  ;;  %v726_v21 = vld [vmem:[%s4860_s13 + $0x10] sm:$0xff]  ;;  %s1784_s28 = ssub.s32 4, %s4427_s12 }
  0xe0   : > { %3804 = vmatprep.subr.bf16.mxu0 %v4447_v0  ;;  %3809 = vmatpush3.bf16.msra.mxu1 %v4886_v13  ;;  %v987_v18 = vsub.f32 1.0, %v739_v16  ;;  %v4901_v20 = vpack.c.bf16 %v725_v15, %v724_v14  ;;  %v727_v22 = vld [vmem:[%s4860_s13 + $0x18] sm:$0xff]  ;;  %s3039_s20 = scalar_lea.vmem %s5300_s3, %s4908_s8  ;;  %v3329_v23 = vld [vmem:[%s3059_s0 + $0x4] sm:$0x3]  ;;  %s3075_s15 = scalar_lea.vmem %s5300_s3, %s4914_s1 }
  0xe1   : > { %983 = vperm.xlu0 %4047, %v739_v16   ;;  %3810 = vmatprep.subr.bf16.mxu1 %v4447_v0  ;;  %v3314_v24 = vld [vmem:[%s3039_s20 + $0x2] sm:$0x3]  ;;  %v4926_v25 = vpack.c.bf16 %v727_v22, %v726_v21  ;;  %s4937_s17 = sshll.u32 %s1784_s28, 1  ;;  %v3344_v27 = vld [vmem:[%s3075_s15 + $0x6] sm:$0x3]  ;;  %s4948_s7 = smul.u32 4294967290, %s4427_s12 }
  0xe2   : > { %1246 = vperm.xlu1 %4048, %v3314_v24   ;;  %v1250_v26 = vsub.f32 1.0, %v3314_v24  ;;  %s1792_s30 = scalar_lea.vmem %s5300_s3, %s4937_s17  ;;  %v1512_v28 = vsub.f32 1.0, %v3329_v23  ;;  %s4960_s28 = smul.u32 4294967286, %s4427_s12  ;;  %v1773_v30 = vsub.f32 1.0, %v3344_v27 }
  0xe3   : > { %3806 = vmatpush3.bf16.msra.mxu0 %v4884_v12  ;;  %v4899_v19 = vld [vmem:[#allocation2] sm:$0x3]  ;;  %s3104_s0 = scalar_lea.vmem %s5300_s3, %s4948_s7  ;;  %s4972_s19 = smul.u32 4294967282, %s4427_s12 }
  0xe4   : > { %3813 = vmatprep.subr.bf16.mxu0 %v4447_v0  ;;  %3812 = vmatpush3.bf16.msra.mxu1 %v4895_v17  ;;  %v1793_v29 = vld [vmem:[%s1792_s30] sm:$0x3]  ;;  %v3365_v31 = vld [vmem:[%s3104_s0 + $0xa] sm:$0x3]  ;;  %s3124_s20 = scalar_lea.vmem %s5300_s3, %s4960_s28  ;;  %s732_s11 = scalar_lea.vmem %s4837_s27, %s4875_s21 [#allocation3] }
  0xe5   : > { %990 = vperm.xlu0 %4047, %v987_v18   ;;  %3819 = vmatprep.subr.bf16.mxu1 %v4447_v0  ;;  %v2034_v32 = vsub.f32 1.0, %v1793_v29  ;;  %v3380_v33 = vld [vmem:[%s3124_s20 + $0xc] sm:$0x3]  ;;  %s3144_s13 = scalar_lea.vmem %s5300_s3, %s4972_s19  ;;  %v2296_v34 = vsub.f32 1.0, %v3365_v31  ;;  %s734_s30 = scalar_lea.vmem %s4845_s22, %s4875_s21 [#allocation6]  ;;  %v733_v38 = vld [vmem:[%s732_s11] sm:$0x3] }
  0xe6   : > { %3546 = vmatmul.mubr.msk.f32.vlgmr.msra.gmra.mrb[0].mxu0 %vm740_vm2, %v4899_v19  ;;  %1253 = vperm.xlu1 %4048, %v1250_v26   ;;  %v3395_v35 = vld [vmem:[%s3144_s13 + $0xe] sm:$0x3]  ;;  %v2558_v36 = vsub.f32 1.0, %v3380_v33  ;;  %v735_v40 = vld [vmem:[%s734_s30] sm:$0x3]  ;;  %p702_p0 = scmp.lt.s32.totalorder %s4427_s12, 1  ;;  %s736_s20 = scalar_lea.vmem %s4853_s26, %s4875_s21 [#allocation8] }
  0xe7   : > { %3815 = vmatpush3.bf16.msra.mxu0 %v4901_v20  ;;  %3567 = vmatprep.mubr.msk.f32.mxu0 %vm4448_vm1, %v4449_v1  ;;  %v2820_v37 = vsub.f32 1.0, %v3395_v35  ;;  %s5359_s25 = sld [smem:[#allocation33_spill]]  ;;  %v737_v57 = vld [vmem:[%s736_s20] sm:$0x3]  ;;  %s4997_s4 = scalar_lea.vmem [#allocation14], %s4833_s23 }
  0xe8   : > { %3557 = vmatmul.mubr.msk.f32.vlgmr.msra.gmra.mrb[0].mxu1 %vm740_vm2, %v4899_v19  ;;  %3816 = vmatprep.subr.bf16.mxu0 %v4447_v0  ;;  %s703_s9 = scalar_select %p702_p0, %s4427_s12, 1 }
  0xe9   : > { %1508 = vperm.xlu0 %4047, %v3329_v23   ;;  %3821 = vmatpush3.bf16.msra.mxu1 %v4877_v6  ;;  %s996_s15 = scalar_lea.vmem %s4997_s4, %s4875_s21 [#allocation14]  ;;  %s3027_s23 = scalar_lea.vmem %s4837_s27, %s4908_s8 [#allocation3] }
  0xea   : > { %3578 = vmatprep.mubr.msk.f32.mxu1 %vm4448_vm1, %v4449_v1  ;;  %3822 = vmatprep.subr.bf16.mxu1 %v4447_v0  ;;  %v3308_v11 = vld [vmem:[%s3027_s23 + $0x2] sm:$0x3]  ;;  %s3031_s21 = scalar_lea.vmem %s4845_s22, %s4908_s8 [#allocation6]  ;;  %s3035_s13 = scalar_lea.vmem %s4853_s26, %s4908_s8 [#allocation8] }
  0xeb   : > { %3818 = vmatpush3.bf16.msra.mxu0 %v4926_v25  ;;  %1515 = vperm.xlu1 %4048, %v1512_v28   ;;  %v3310_v18 = vld [vmem:[%s3031_s21 + $0x2] sm:$0x3]  ;;  %s3043_s11 = scalar_lea.vmem %s4997_s4, %s4908_s8 [#allocation14]  ;;  %s3047_s8 = scalar_lea.vmem %s4837_s27, %s4889_s18 [#allocation3] }
  0xec   : > { %3825 = vmatprep.subr.bf16.mxu0 %v4447_v0  ;;  %s3051_s30 = scalar_lea.vmem %s4845_s22, %s4889_s18 [#allocation6]  ;;  %s3063_s29 = scalar_lea.vmem %s4997_s4, %s4889_s18 [#allocation14] }
  0xed   : > { %1769 = vperm.xlu0 %4047, %v3344_v27   ;;  %3824 = vmatpush3.bf16.msra.mxu1 %v4884_v12  ;;  %s704_s24 = scalar_lea.vmem %s5359_s25, %s703_s9  ;;  %s3055_s9 = scalar_lea.vmem %s4853_s26, %s4889_s18 [#allocation8] }
  0xee   : > { %3568 = vmatmul.mubr.msk.f32.vlgmr.msra.gmra.mrb[2].mxu0 %vm740_vm2, %v4899_v19  ;;  %3831 = vmatprep.subr.bf16.mxu1 %v4447_v0  ;;  %v4989_v53 = vld [vmem:[%s704_s24] ss:$0 sm:$0xff]  ;;  %s3066_s18 = scalar_lea.vmem %s4837_s27, %s4914_s1 [#allocation3]  ;;  %s3069_s0 = scalar_lea.vmem %s4845_s22, %s4914_s1 [#allocation6] }
  0xef   : > { %3827 = vmatpush3.bf16.msra.mxu0 %v4886_v13  ;;  %3589 = vmatprep.mubr.msk.f32.mxu0 %vm4448_vm1, %v4449_v1  ;;  %s3072_s25 = scalar_lea.vmem %s4853_s26, %s4914_s1 [#allocation8]  ;;  %s3078_s24 = scalar_lea.vmem %s4997_s4, %s4914_s1 [#allocation14] }
  0xf0   : > { %3828 = vmatprep.subr.bf16.mxu0 %v4447_v0  ;;  %1776 = vperm.xlu1 %4048, %v1773_v30   ;;  %s1786_s1 = scalar_lea.vmem %s4837_s27, %s4937_s17 [#allocation3]  ;;  %s1788_s20 = scalar_lea.vmem %s4845_s22, %s4937_s17 [#allocation6] }
  0xf1   : > { %2030 = vperm.xlu0 %4047, %v1793_v29   ;;  %s2043_s23 = scalar_lea.vmem %s4997_s4, %s4937_s17 [#allocation14]  ;;  %s3096_s21 = scalar_lea.vmem %s4845_s22, %s4948_s7 [#allocation6] }
  0xf3   : > { %3830 = vmatpush3.bf16.msra.mxu0 %v4895_v17 }
  0xf4   : > { %3837 = vmatprep.subr.bf16.mxu0 %v4447_v0  ;;  %2037 = vperm.xlu1 %4048, %v2034_v32  }
  0xf5   : > { %2292 = vperm.xlu0 %4047, %v3365_v31  }
  0xf8   : > { %2299 = vperm.xlu1 %4048, %v2296_v34   ;;  %v3312_v34 = vld [vmem:[%s3035_s13 + $0x2] sm:$0x3]  ;;  %s3100_s13 = scalar_lea.vmem %s4853_s26, %s4948_s7 [#allocation8] }
  0xf9   : > { %2554 = vperm.xlu0 %4047, %v3380_v33  }
  0xfc   : > { %2561 = vperm.xlu1 %4048, %v2558_v36  }
  0xfd   : > { %2816 = vperm.xlu0 %4047, %v3395_v35  }
 0x100   : > { %2823 = vperm.xlu1 %4048, %v2820_v37  }
 0x160   : > { %v984_v62 = vpop.permute.xlu0 %983 }
 0x164   : > { %v991_v5 = vpop.permute.xlu0 %990 }
 0x165   : > { %v993_v7 = vmul.f32 %v991_v5, %v4899_v19 }
 0x1b9   : > { %v810_v39 = vpop.f32.mrb[0].mxu0 }
 0x1ba   : > { %v814_v41 = vadd.f32 %v810_v39, %v733_v38  ;;  %v3547_v42 = vpop.f32.mrb[1].mxu0  ;;  %v1247_v38 = vpop.permute.xlu1 %1246 }
 0x1bb   : > { %v887_v43 = vpop.f32.mrb[0].mxu1 }
 0x1bc   : > { %v3302_v44 = vmul.f32 -1.442695, %v814_v41  ;;  %v891_v45 = vadd.f32 %v887_v43, %v735_v40  ;;  %v3558_v46 = vpop.f32.mrb[1].mxu1 }
 0x1be   : > { %4049 = vpow2.f32 %v3302_v44  ;;  %v3304_v47 = vmul.f32 -1.442695, %v891_v45  ;;  %v1254_v43 = vpop.permute.xlu1 %1253 }
 0x1c0   : > { %4051 = vpow2.f32 %v3304_v47 }
 0x1c1   : > { %v970_v48 = vpop.f32.mrb[2].mxu0 }
 0x1c2   : > { %v3569_v49 = vpop.f32.mrb[3].mxu0  ;;  %v971_v55 = vadd.f32 %v4989_v53, %v970_v48 }
 0x1c3   : > { %v3323_v49 = vld [vmem:[%s3047_s8 + $0x4] sm:$0x3]  ;;  %s3116_s8 = scalar_lea.vmem %s4845_s22, %s4960_s28 [#allocation6] }
 0x1c8   : > { %v4050_v50 = vpop.eup %4049 }
 0x1c9   : > { %v818_v51 = vadd.f32 1.0, %v4050_v50 }
 0x1ca   : > { %v4052_v52 = vpop.eup %4051 }
 0x1cb   : > { %4053 = vrcp.f32 %v818_v51  ;;  %v895_v54 = vadd.f32 1.0, %v4052_v52 }
 0x1cd   : > { %4055 = vrcp.f32 %v895_v54  ;;  %v3325_v54 = vld [vmem:[%s3051_s30 + $0x4] sm:$0x3]  ;;  %s3120_s30 = scalar_lea.vmem %s4853_s26, %s4960_s28 [#allocation8] }
 0x1d5   : > { %v4054_v56 = vpop.eup %4053 }
 0x1d6   : > { %v974_v58 = vmul.f32 %v4054_v56, %v971_v55 }
 0x1d7   : > { %v4056_v60 = vpop.eup %4055 }
 0x1d8   : > { %v975_v59 = vadd.f32 %v974_v58, %v737_v57  ;;  %v977_v61 = vsub.f32 1.0, %v4056_v60  ;;  %v979_v2 = vmul.f32 %v4056_v60, %v4899_v19 }
 0x1da   : > { %4057 = vtanh.f32 %v975_v59 }
 0x1e4   : > { %v4058_v63 = vpop.eup %4057 }
 0x1e5   : > { %v978_v3 = vmul.f32 %v4058_v63, %v977_v61 }
 0x1e7   : > { %v980_v4 = vadd.f32 %v979_v2, %v978_v3 }
 0x1e9   : > { %v986_v8 = vmul.f32 %v984_v62, %v980_v4 }
 0x1eb   : > { %v994_v9 = vadd.f32 %v993_v7, %v986_v8  ;;  %v3327_v7 = vld [vmem:[%s3055_s9 + $0x4] sm:$0x3]  ;;  %s3128_s9 = scalar_lea.vmem %s4997_s4, %s4960_s28 [#allocation14] }
 0x1ed   : > { %v995_v10 = vmul.f32 %v994_v9, %v984_v62  ;;  %3579 = vmatmul.mubr.msk.f32.vlgmr.msra.gmra.mrb[2].mxu1 %vm740_vm2, %v994_v9  ;;  %3590 = vmatmul.mubr.msk.f32.vlgmr.msra.gmra.mrb[4].mxu0 %vm740_vm2, %v994_v9  ;;  %v1256_v45 = vmul.f32 %v1254_v43, %v994_v9 }
 0x1ee   : > { %3833 = vmatpush3.bf16.msra.mxu1 %v4901_v20  ;;  %3600 = vmatprep.mubr.msk.f32.mxu1 %vm4448_vm1, %v4449_v1 }
 0x1ef   : > { %998 = vst.msk [vmem:[%s996_s15] sm:$0x3] %vm714_vm0, %v995_v10  ;;  %3834 = vmatprep.subr.bf16.mxu1 %v4447_v0  ;;  %3839 = vmatpush3.bf16.msra.mxu0 %v4877_v6  ;;  %s1790_s15 = scalar_lea.vmem %s4853_s26, %s4937_s17 [#allocation8]  ;;  %s3092_s17 = scalar_lea.vmem %s4837_s27, %s4948_s7 [#allocation3] }
 0x1f0   : > { %3840 = vmatprep.subr.bf16.mxu0 %v4447_v0  ;;  %3611 = vmatprep.mubr.msk.f32.mxu0 %vm4448_vm1, %v4449_v1 }
 0x1f2   : > { %3836 = vmatpush3.bf16.msra.mxu1 %v4926_v25 }
 0x1f3   : > { %3843 = vmatprep.subr.bf16.mxu1 %v4447_v0  ;;  %3842 = vmatpush3.bf16.msra.mxu0 %v4884_v12 }
 0x1f4   : > { %3849 = vmatprep.subr.bf16.mxu0 %v4447_v0 }
 0x1f5   : > { %3601 = vmatmul.mubr.msk.f32.vlgmr.msra.gmra.mrb[4].mxu1 %vm740_vm2, %v994_v9 }
 0x1f6   : > { %3845 = vmatpush3.bf16.msra.mxu1 %v4886_v13  ;;  %3622 = vmatprep.mubr.msk.f32.mxu1 %vm4448_vm1, %v4449_v1 }
 0x1f7   : > { %3846 = vmatprep.subr.bf16.mxu1 %v4447_v0 }
 0x1fa   : > { %3848 = vmatpush3.bf16.msra.mxu1 %v4895_v17 }
 0x1fb   : > { %3855 = vmatprep.subr.bf16.mxu1 %v4447_v0 }
 0x2c0   : > { %v1079_v14 = vpop.f32.mrb[2].mxu1  ;;  %v1156_v15 = vpop.f32.mrb[4].mxu0 }
 0x2c1   : > { %v1083_v16 = vadd.f32 %v3308_v11, %v1079_v14  ;;  %v3580_v19 = vpop.f32.mrb[3].mxu1  ;;  %v3591_v21 = vpop.f32.mrb[5].mxu0  ;;  %v1160_v23 = vadd.f32 %v3310_v18, %v1156_v15 }
 0x2c2   : > { %v1509_v19 = vpop.permute.xlu0 %1508  ;;  %v1516_v21 = vpop.permute.xlu1 %1515 }
 0x2c3   : > { %v3316_v22 = vmul.f32 -1.442695, %v1083_v16  ;;  %v3318_v24 = vmul.f32 -1.442695, %v1160_v23 }
 0x2c5   : > { %4059 = vpow2.f32 %v3316_v22 }
 0x2c6   : > { %4061 = vpow2.f32 %v3318_v24 }
 0x2c8   : > { %v1233_v26 = vpop.f32.mrb[4].mxu1 }
 0x2c9   : > { %v3602_v27 = vpop.f32.mrb[5].mxu1  ;;  %v1234_v32 = vadd.f32 %v4989_v53, %v1233_v26 }
 0x2ca   : > { %v3338_v27 = vld [vmem:[%s3066_s18 + $0x6] sm:$0x3]  ;;  %s3148_s18 = scalar_lea.vmem %s4997_s4, %s4972_s19 [#allocation14] }
 0x2cf   : > { %v4060_v28 = vpop.eup %4059 }
 0x2d0   : > { %v1087_v29 = vadd.f32 1.0, %v4060_v28  ;;  %v4062_v30 = vpop.eup %4061 }
 0x2d1   : > { %v1164_v31 = vadd.f32 1.0, %v4062_v30 }
 0x2d2   : > { %4063 = vrcp.f32 %v1087_v29 }
 0x2d3   : > { %4065 = vrcp.f32 %v1164_v31  ;;  %v3340_v31 = vld [vmem:[%s3069_s0 + $0x6] sm:$0x3] }
 0x2dc   : > { %v4064_v33 = vpop.eup %4063 }
 0x2dd   : > { %v1237_v35 = vmul.f32 %v4064_v33, %v1234_v32  ;;  %v4066_v37 = vpop.eup %4065 }
 0x2de   : > { %v1240_v39 = vsub.f32 1.0, %v4066_v37  ;;  %v1242_v41 = vmul.f32 %v4066_v37, %v994_v9 }
 0x2df   : > { %v1238_v36 = vadd.f32 %v3312_v34, %v1237_v35 }
 0x2e1   : > { %4067 = vtanh.f32 %v1238_v36 }
 0x2eb   : > { %v4068_v40 = vpop.eup %4067 }
 0x2ec   : > { %v1241_v42 = vmul.f32 %v4068_v40, %v1240_v39 }
 0x2ee   : > { %v1243_v44 = vadd.f32 %v1242_v41, %v1241_v42 }
 0x2f0   : > { %v1249_v46 = vmul.f32 %v1247_v38, %v1243_v44 }
 0x2f2   : > { %v1257_v47 = vadd.f32 %v1256_v45, %v1249_v46  ;;  %v3342_v45 = vld [vmem:[%s3072_s25 + $0x6] sm:$0x3] }
 0x2f4   : > { %v1258_v48 = vmul.f32 %v1257_v47, %v1247_v38  ;;  %3612 = vmatmul.mubr.msk.f32.vlgmr.msra.gmra.mrb[6].mxu0 %vm740_vm2, %v1257_v47  ;;  %3623 = vmatmul.mubr.msk.f32.vlgmr.msra.gmra.mrb[6].mxu1 %vm740_vm2, %v1257_v47  ;;  %v1518_v22 = vmul.f32 %v1516_v21, %v1257_v47 }
 0x2f5   : > { %3851 = vmatpush3.bf16.msra.mxu0 %v4901_v20  ;;  %3633 = vmatprep.mubr.msk.f32.mxu0 %vm4448_vm1, %v4449_v1 }
 0x2f6   : > { %3321 = vst.msk [vmem:[%s3043_s11 + $0x2] sm:$0x3] %vm714_vm0, %v1258_v48  ;;  %3852 = vmatprep.subr.bf16.mxu0 %v4447_v0  ;;  %3857 = vmatpush3.bf16.msra.mxu1 %v4877_v6  ;;  %s3108_s11 = scalar_lea.vmem %s4997_s4, %s4948_s7 [#allocation14]  ;;  %s3112_s7 = scalar_lea.vmem %s4837_s27, %s4960_s28 [#allocation3] }
 0x2f7   : > { %3858 = vmatprep.subr.bf16.mxu1 %v4447_v0  ;;  %3644 = vmatprep.mubr.msk.f32.mxu1 %vm4448_vm1, %v4449_v1  ;;  %s3136_s28 = scalar_lea.vmem %s4845_s22, %s4972_s19 [#allocation6]  ;;  %s3299_s22 = sshll.u32 %s4830_s16, 1 }
 0x2f8   : > { %s672_s0 = scalar_lea.vmem [#allocation15], %s3299_s22 }
 0x2f9   : > { %3854 = vmatpush3.bf16.msra.mxu0 %v4926_v25  ;;  %s2877_s25 = sshll.u32 %s672_s0, 4  ;;  %s5213_s25 = int_to_ptr.vmem [resolvable:$true] %s2877_s25 }
 0x2fa   : > { %3861 = vmatprep.subr.bf16.mxu0 %v4447_v0  ;;  %3860 = vmatpush3.bf16.msra.mxu1 %v4884_v12 }
 0x2fb   : > { %3867 = vmatprep.subr.bf16.mxu1 %v4447_v0 }
 0x2fc   : > { %3634 = vmatmul.mubr.msk.f32.vlgmr.msra.gmra.mrb[8].mxu0 %vm740_vm2, %v1257_v47 }
 0x2fd   : > { %3863 = vmatpush3.bf16.msra.mxu0 %v4886_v13  ;;  %3655 = vmatprep.mubr.msk.f32.mxu0 %vm4448_vm1, %v4449_v1 }
 0x2fe   : > { %3864 = vmatprep.subr.bf16.mxu0 %v4447_v0 }
 0x301   : > { %3866 = vmatpush3.bf16.msra.mxu0 %v4895_v17 }
 0x302   : > { %3873 = vmatprep.subr.bf16.mxu0 %v4447_v0 }
 0x3c7   : > { %v1341_v50 = vpop.f32.mrb[6].mxu0  ;;  %v1418_v51 = vpop.f32.mrb[6].mxu1 }
 0x3c8   : > { %v1345_v52 = vadd.f32 %v3323_v49, %v1341_v50  ;;  %v3613_v55 = vpop.f32.mrb[7].mxu0  ;;  %v3624_v56 = vpop.f32.mrb[7].mxu1  ;;  %v1422_v58 = vadd.f32 %v3325_v54, %v1418_v51 }
 0x3c9   : > { %v1770_v55 = vpop.permute.xlu0 %1769  ;;  %v1777_v56 = vpop.permute.xlu1 %1776 }
 0x3ca   : > { %v3331_v57 = vmul.f32 -1.442695, %v1345_v52  ;;  %v3333_v59 = vmul.f32 -1.442695, %v1422_v58 }
 0x3cc   : > { %4069 = vpow2.f32 %v3331_v57 }
 0x3cd   : > { %4071 = vpow2.f32 %v3333_v59 }
 0x3cf   : > { %v1495_v60 = vpop.f32.mrb[8].mxu0 }
 0x3d0   : > { %v3635_v61 = vpop.f32.mrb[9].mxu0  ;;  %v1496_v4 = vadd.f32 %v4989_v53, %v1495_v60 }
 0x3d1   : > { %v1787_v61 = vld [vmem:[%s1786_s1] sm:$0x3]  ;;  %s3416_s1 = sshll.u32 %s4427_s12, 8 }
 0x3d6   : > { %v4070_v62 = vpop.eup %4069 }
 0x3d7   : > { %v1349_v63 = vadd.f32 1.0, %v4070_v62  ;;  %v4072_v2 = vpop.eup %4071 }
 0x3d8   : > { %v1426_v3 = vadd.f32 1.0, %v4072_v2 }
 0x3d9   : > { %4073 = vrcp.f32 %v1349_v63 }
 0x3da   : > { %4075 = vrcp.f32 %v1426_v3  ;;  %v1789_v3 = vld [vmem:[%s1788_s20] sm:$0x3]  ;;  %s2861_s20 = sshll.u32 %s4997_s4, 4  ;;  %s5220_s20 = int_to_ptr.vmem [resolvable:$true] %s2861_s20 }
 0x3e3   : > { %v4074_v5 = vpop.eup %4073 }
 0x3e4   : > { %v1499_v8 = vmul.f32 %v4074_v5, %v1496_v4  ;;  %v4076_v10 = vpop.eup %4075 }
 0x3e5   : > { %v1502_v11 = vsub.f32 1.0, %v4076_v10  ;;  %v1504_v15 = vmul.f32 %v4076_v10, %v1257_v47 }
 0x3e6   : > { %v1500_v9 = vadd.f32 %v3327_v7, %v1499_v8 }
 0x3e8   : > { %4077 = vtanh.f32 %v1500_v9 }
 0x3f2   : > { %v4078_v14 = vpop.eup %4077 }
 0x3f3   : > { %v1503_v16 = vmul.f32 %v4078_v14, %v1502_v11 }
 0x3f5   : > { %v1505_v18 = vadd.f32 %v1504_v15, %v1503_v16 }
 0x3f7   : > { %v1511_v23 = vmul.f32 %v1509_v19, %v1505_v18 }
 0x3f9   : > { %v1519_v24 = vadd.f32 %v1518_v22, %v1511_v23  ;;  %v1791_v22 = vld [vmem:[%s1790_s15] sm:$0x3] }
 0x3fb   : > { %v1520_v26 = vmul.f32 %v1519_v24, %v1509_v19  ;;  %3645 = vmatmul.mubr.msk.f32.vlgmr.msra.gmra.mrb[8].mxu1 %vm740_vm2, %v1519_v24  ;;  %3656 = vmatmul.mubr.msk.f32.vlgmr.msra.gmra.mrb[10].mxu0 %vm740_vm2, %v1519_v24  ;;  %v1779_v58 = vmul.f32 %v1777_v56, %v1519_v24 }
 0x3fc   : > { %3869 = vmatpush3.bf16.msra.mxu1 %v4901_v20  ;;  %3666 = vmatprep.mubr.msk.f32.mxu1 %vm4448_vm1, %v4449_v1 }
 0x3fd   : > { %3336 = vst.msk [vmem:[%s3063_s29 + $0x4] sm:$0x3] %vm714_vm0, %v1520_v26  ;;  %3870 = vmatprep.subr.bf16.mxu1 %v4447_v0  ;;  %3875 = vmatpush3.bf16.msra.mxu0 %v4877_v6  ;;  %s3132_s29 = scalar_lea.vmem %s4837_s27, %s4972_s19 [#allocation3]  ;;  %s3140_s27 = scalar_lea.vmem %s4853_s26, %s4972_s19 [#allocation8] }
 0x3fe   : > { %3876 = vmatprep.subr.bf16.mxu0 %v4447_v0  ;;  %3677 = vmatprep.mubr.msk.f32.mxu0 %vm4448_vm1, %v4449_v1  ;;  %s3407_s26 = sshll.u32 %s4427_s12, 5  ;;  %s2842_s12 = scalar_lea.sflag [#allocation16], %s4830_s16 }
 0x400   : > { %3872 = vmatpush3.bf16.msra.mxu1 %v4926_v25 }
 0x401   : > { %3879 = vmatprep.subr.bf16.mxu1 %v4447_v0  ;;  %3878 = vmatpush3.bf16.msra.mxu0 %v4884_v12 }
 0x402   : > { %3885 = vmatprep.subr.bf16.mxu0 %v4447_v0 }
 0x403   : > { %3667 = vmatmul.mubr.msk.f32.vlgmr.msra.gmra.mrb[10].mxu1 %vm740_vm2, %v1519_v24 }
 0x404   : > { %3881 = vmatpush3.bf16.msra.mxu1 %v4886_v13  ;;  %3688 = vmatprep.mubr.msk.f32.mxu1 %vm4448_vm1, %v4449_v1 }
 0x405   : > { %3882 = vmatprep.subr.bf16.mxu1 %v4447_v0 }
 0x408   : > { %3884 = vmatpush3.bf16.msra.mxu1 %v4895_v17 }
 0x409   : > { %3891 = vmatprep.subr.bf16.mxu1 %v4447_v0 }
 0x4ce   : > { %v1602_v28 = vpop.f32.mrb[8].mxu1  ;;  %v1679_v29 = vpop.f32.mrb[10].mxu0 }
 0x4cf   : > { %v1606_v30 = vadd.f32 %v3338_v27, %v1602_v28  ;;  %v3646_v32 = vpop.f32.mrb[9].mxu1  ;;  %v3657_v33 = vpop.f32.mrb[11].mxu0  ;;  %v1683_v35 = vadd.f32 %v3340_v31, %v1679_v29 }
 0x4d0   : > { %v2031_v32 = vpop.permute.xlu0 %2030  ;;  %v2038_v33 = vpop.permute.xlu1 %2037 }
 0x4d1   : > { %v3346_v34 = vmul.f32 -1.442695, %v1606_v30  ;;  %v3348_v36 = vmul.f32 -1.442695, %v1683_v35 }
 0x4d3   : > { %4079 = vpow2.f32 %v3346_v34 }
 0x4d4   : > { %4081 = vpow2.f32 %v3348_v36 }
 0x4d6   : > { %v1756_v37 = vpop.f32.mrb[10].mxu1 }
 0x4d7   : > { %v3668_v38 = vpop.f32.mrb[11].mxu1  ;;  %v1757_v43 = vadd.f32 %v4989_v53, %v1756_v37 }
 0x4d8   : > { %v3359_v38 = vld [vmem:[%s3092_s17 + $0xa] sm:$0x3]  ;;  %s5361_s17 = sld [smem:[#allocation35_spill]] }
 0x4dd   : > { %v4080_v39 = vpop.eup %4079 }
 0x4de   : > { %v1610_v40 = vadd.f32 1.0, %v4080_v39  ;;  %v4082_v41 = vpop.eup %4081 }
 0x4df   : > { %v1687_v42 = vadd.f32 1.0, %v4082_v41 }
 0x4e0   : > { %4083 = vrcp.f32 %v1610_v40 }
 0x4e1   : > { %4085 = vrcp.f32 %v1687_v42  ;;  %v3361_v42 = vld [vmem:[%s3096_s21 + $0xa] sm:$0x3]  ;;  %s5211_s21 = scalar_lea.hbm %s5361_s17, %s3407_s26 }
 0x4ea   : > { %v4084_v44 = vpop.eup %4083 }
 0x4eb   : > { %v1760_v46 = vmul.f32 %v4084_v44, %v1757_v43  ;;  %v4086_v48 = vpop.eup %4085 }
 0x4ec   : > { %v1763_v49 = vsub.f32 1.0, %v4086_v48  ;;  %v1765_v51 = vmul.f32 %v4086_v48, %v1519_v24 }
 0x4ed   : > { %v1761_v47 = vadd.f32 %v3342_v45, %v1760_v46 }
 0x4ef   : > { %4087 = vtanh.f32 %v1761_v47 }
 0x4f9   : > { %v4088_v50 = vpop.eup %4087 }
 0x4fa   : > { %v1764_v52 = vmul.f32 %v4088_v50, %v1763_v49 }
 0x4fc   : > { %v1766_v54 = vadd.f32 %v1765_v51, %v1764_v52 }
 0x4fe   : > { %v1772_v57 = vmul.f32 %v1770_v55, %v1766_v54 }
 0x500   : > { %v1780_v59 = vadd.f32 %v1779_v58, %v1772_v57  ;;  %v3363_v57 = vld [vmem:[%s3100_s13 + $0xa] sm:$0x3] }
 0x502   : > { %v1781_v60 = vmul.f32 %v1780_v59, %v1770_v55  ;;  %3678 = vmatmul.mubr.msk.f32.vlgmr.msra.gmra.mrb[12].mxu0 %vm740_vm2, %v1780_v59  ;;  %3689 = vmatmul.mubr.msk.f32.vlgmr.msra.gmra.mrb[12].mxu1 %vm740_vm2, %v1780_v59  ;;  %v2040_v35 = vmul.f32 %v2038_v33, %v1780_v59 }
 0x503   : > { %3887 = vmatpush3.bf16.msra.mxu0 %v4901_v20  ;;  %3699 = vmatprep.mubr.msk.f32.mxu0 %vm4448_vm1, %v4449_v1 }
 0x504   : > { %3351 = vst.msk [vmem:[%s3078_s24 + $0x6] sm:$0x3] %vm714_vm0, %v1781_v60  ;;  %3888 = vmatprep.subr.bf16.mxu0 %v4447_v0  ;;  %3893 = vmatpush3.bf16.msra.mxu1 %v4877_v6  ;;  %s5360_s24 = sld [smem:[#allocation27_spill]] }
 0x505   : > { %3894 = vmatprep.subr.bf16.mxu1 %v4447_v0  ;;  %3710 = vmatprep.mubr.msk.f32.mxu1 %vm4448_vm1, %v4449_v1 }
 0x507   : > { %3890 = vmatpush3.bf16.msra.mxu0 %v4926_v25 }
 0x508   : > { %3897 = vmatprep.subr.bf16.mxu0 %v4447_v0  ;;  %3896 = vmatpush3.bf16.msra.mxu1 %v4884_v12 }
 0x509   : > { %3903 = vmatprep.subr.bf16.mxu1 %v4447_v0 }
 0x50a   : > { %3700 = vmatmul.mubr.msk.f32.vlgmr.msra.gmra.mrb[14].mxu0 %vm740_vm2, %v1780_v59  ;;  %p5363_p9 = scmp.ne.s32.totalorder %s5360_s24, 0 }
 0x50b   : > { %3899 = vmatpush3.bf16.msra.mxu0 %v4886_v13  ;;  %3721 = vmatprep.mubr.msk.f32.mxu0 %vm4448_vm1, %v4449_v1 }
 0x50c   : > { %3900 = vmatprep.subr.bf16.mxu0 %v4447_v0 }
 0x50f   : > { %3902 = vmatpush3.bf16.msra.mxu0 %v4895_v17 }
 0x510   : > { %3909 = vmatprep.subr.bf16.mxu0 %v4447_v0 }
 0x5d5   : > { %v1863_v62 = vpop.f32.mrb[12].mxu0  ;;  %v1940_v63 = vpop.f32.mrb[12].mxu1 }
 0x5d6   : > { %v1867_v2 = vadd.f32 %v1863_v62, %v1787_v61  ;;  %v3679_v4 = vpop.f32.mrb[13].mxu0  ;;  %v3690_v5 = vpop.f32.mrb[13].mxu1  ;;  %v1944_v8 = vadd.f32 %v1940_v63, %v1789_v3 }
 0x5d7   : > { %v2293_v4 = vpop.permute.xlu0 %2292  ;;  %v2300_v5 = vpop.permute.xlu1 %2299 }
 0x5d8   : > { %v3354_v7 = vmul.f32 -1.442695, %v1867_v2  ;;  %v3356_v9 = vmul.f32 -1.442695, %v1944_v8 }
 0x5da   : > { %4089 = vpow2.f32 %v3354_v7 }
 0x5db   : > { %4091 = vpow2.f32 %v3356_v9 }
 0x5dd   : > { %v2017_v10 = vpop.f32.mrb[14].mxu0 }
 0x5de   : > { %v3701_v11 = vpop.f32.mrb[15].mxu0  ;;  %v2018_v19 = vadd.f32 %v4989_v53, %v2017_v10 }
 0x5e4   : > { %v4090_v14 = vpop.eup %4089 }
 0x5e5   : > { %v1871_v15 = vadd.f32 1.0, %v4090_v14  ;;  %v4092_v16 = vpop.eup %4091 }
 0x5e6   : > { %v1948_v18 = vadd.f32 1.0, %v4092_v16 }
 0x5e7   : > { %4093 = vrcp.f32 %v1871_v15 }
 0x5e8   : > { %4095 = vrcp.f32 %v1948_v18 }
 0x5f1   : > { %v4094_v21 = vpop.eup %4093 }
 0x5f2   : > { %v2021_v23 = vmul.f32 %v4094_v21, %v2018_v19  ;;  %v4096_v26 = vpop.eup %4095 }
 0x5f3   : > { %v2024_v27 = vsub.f32 1.0, %v4096_v26  ;;  %v2026_v29 = vmul.f32 %v4096_v26, %v1780_v59 }
 0x5f4   : > { %v2022_v24 = vadd.f32 %v2021_v23, %v1791_v22 }
 0x5f6   : > { %4097 = vtanh.f32 %v2022_v24 }
 0x600   : > { %v4098_v28 = vpop.eup %4097 }
 0x601   : > { %v2025_v30 = vmul.f32 %v4098_v28, %v2024_v27 }
 0x603   : > { %v2027_v31 = vadd.f32 %v2026_v29, %v2025_v30  ;;  %v3378_v30 = vld [vmem:[%s3120_s30 + $0xc] sm:$0x3]  ;;  %s4309_s30 = scalar_lea.vmem %s5213_s25, 32 }
 0x604   : > { %p4310_p10 = scmp.ne.s32.totalorder %s5213_s25, %s4309_s30 }
 0x605   : > { %v2033_v34 = vmul.f32 %v2031_v32, %v2027_v31 }
 0x606   : > { %p4311_p12 = pnand %p4310_p10, %p5363_p9 }
 0x607   : > { %v2041_v36 = vadd.f32 %v2040_v35, %v2033_v34 }
 0x608   : > { %p4312_p8 = pneg %p4311_p12 }
 0x609   : > { %v2042_v37 = vmul.f32 %v2041_v36, %v2031_v32  ;;  %3711 = vmatmul.mubr.msk.f32.vlgmr.msra.gmra.mrb[14].mxu1 %vm740_vm2, %v2041_v36  ;;  %3722 = vmatmul.mubr.msk.f32.vlgmr.msra.gmra.mrb[16].mxu0 %vm740_vm2, %v2041_v36  ;;  %v2302_v8 = vmul.f32 %v2300_v5, %v2041_v36 }
 0x60a   : > { %3905 = vmatpush3.bf16.msra.mxu1 %v4901_v20  ;;  %3732 = vmatprep.mubr.msk.f32.mxu1 %vm4448_vm1, %v4449_v1 }
 0x60b   : > { %2044 = vst.msk [vmem:[%s2043_s23] sm:$0x3] %vm714_vm0, %v2042_v37  ;;  %3906 = vmatprep.subr.bf16.mxu1 %v4447_v0  ;;  %3911 = vmatpush3.bf16.msra.mxu0 %v4877_v6 }
 0x60c   : > { %3912 = vmatprep.subr.bf16.mxu0 %v4447_v0  ;;  %3743 = vmatprep.mubr.msk.f32.mxu0 %vm4448_vm1, %v4449_v1 }
 0x60e   : > { %3908 = vmatpush3.bf16.msra.mxu1 %v4926_v25 }
 0x60f   : > { %3915 = vmatprep.subr.bf16.mxu1 %v4447_v0  ;;  %3914 = vmatpush3.bf16.msra.mxu0 %v4884_v12 }
 0x610   : > { %3921 = vmatprep.subr.bf16.mxu0 %v4447_v0 }
 0x611   : > { %3733 = vmatmul.mubr.msk.f32.vlgmr.msra.gmra.mrb[16].mxu1 %vm740_vm2, %v2041_v36 }
 0x612   : > { %3917 = vmatpush3.bf16.msra.mxu1 %v4886_v13  ;;  %3754 = vmatprep.mubr.msk.f32.mxu1 %vm4448_vm1, %v4449_v1 }
 0x613   : > { %3918 = vmatprep.subr.bf16.mxu1 %v4447_v0 }
 0x616   : > { %3920 = vmatpush3.bf16.msra.mxu1 %v4895_v17 }
 0x617   : > { %3927 = vmatprep.subr.bf16.mxu1 %v4447_v0 }
 0x6dc   : > { %v2125_v39 = vpop.f32.mrb[14].mxu1  ;;  %v2202_v40 = vpop.f32.mrb[16].mxu0 }
 0x6dd   : > { %v2129_v41 = vadd.f32 %v3359_v38, %v2125_v39  ;;  %v3712_v43 = vpop.f32.mrb[15].mxu1  ;;  %v3723_v44 = vpop.f32.mrb[17].mxu0  ;;  %v2206_v46 = vadd.f32 %v3361_v42, %v2202_v40 }
 0x6de   : > { %v2555_v39 = vpop.permute.xlu0 %2554  ;;  %v2562_v40 = vpop.permute.xlu1 %2561 }
 0x6df   : > { %v3367_v45 = vmul.f32 -1.442695, %v2129_v41  ;;  %v3369_v47 = vmul.f32 -1.442695, %v2206_v46 }
 0x6e1   : > { %4099 = vpow2.f32 %v3367_v45  ;;  %v3389_v45 = vld [vmem:[%s3132_s29 + $0xe] sm:$0x3] }
 0x6e2   : > { %4101 = vpow2.f32 %v3369_v47 }
 0x6e4   : > { %v2279_v48 = vpop.f32.mrb[16].mxu1 }
 0x6e5   : > { %v3734_v49 = vpop.f32.mrb[17].mxu1  ;;  %v2280_v55 = vadd.f32 %v4989_v53, %v2279_v48 }
 0x6eb   : > { %v4100_v50 = vpop.eup %4099 }
 0x6ec   : > { %v2133_v51 = vadd.f32 1.0, %v4100_v50  ;;  %v4102_v52 = vpop.eup %4101 }
 0x6ed   : > { %v2210_v54 = vadd.f32 1.0, %v4102_v52 }
 0x6ee   : > { %4103 = vrcp.f32 %v2133_v51 }
 0x6ef   : > { %4105 = vrcp.f32 %v2210_v54 }
 0x6f8   : > { %v4104_v56 = vpop.eup %4103 }
 0x6f9   : > { %v2283_v58 = vmul.f32 %v4104_v56, %v2280_v55  ;;  %v4106_v60 = vpop.eup %4105 }
 0x6fa   : > { %v2286_v61 = vsub.f32 1.0, %v4106_v60  ;;  %v2288_v63 = vmul.f32 %v4106_v60, %v2041_v36  ;;  %v3393_v60 = vld [vmem:[%s3140_s27 + $0xe] sm:$0x3] }
 0x6fb   : > { %v2284_v59 = vadd.f32 %v3363_v57, %v2283_v58 }
 0x6fd   : > { %4107 = vtanh.f32 %v2284_v59 }
 0x707   : > { %v4108_v62 = vpop.eup %4107 }
 0x708   : > { %v2287_v2 = vmul.f32 %v4108_v62, %v2286_v61 }
 0x70a   : > { %v2289_v3 = vadd.f32 %v2288_v63, %v2287_v2 }
 0x70c   : > { %v2295_v7 = vmul.f32 %v2293_v4, %v2289_v3 }
 0x70e   : > { %v2303_v9 = vadd.f32 %v2302_v8, %v2295_v7  ;;  %v2817_v8 = vpop.permute.xlu0 %2816 }
 0x710   : > { %v2304_v10 = vmul.f32 %v2303_v9, %v2293_v4  ;;  %3744 = vmatmul.mubr.msk.f32.vlgmr.msra.gmra.mrb[18].mxu0 %vm740_vm2, %v2303_v9  ;;  %3755 = vmatmul.mubr.msk.f32.vlgmr.msra.gmra.mrb[18].mxu1 %vm740_vm2, %v2303_v9  ;;  %v2564_v42 = vmul.f32 %v2562_v40, %v2303_v9 }
 0x711   : > { %3923 = vmatpush3.bf16.msra.mxu0 %v4901_v20  ;;  %3765 = vmatprep.mubr.msk.f32.mxu0 %vm4448_vm1, %v4449_v1 }
 0x712   : > { %3372 = vst.msk [vmem:[%s3108_s11 + $0xa] sm:$0x3] %vm714_vm0, %v2304_v10  ;;  %3924 = vmatprep.subr.bf16.mxu0 %v4447_v0  ;;  %3929 = vmatpush3.bf16.msra.mxu1 %v4877_v6  ;;  %v3374_v6 = vld [vmem:[%s3112_s7 + $0xc] sm:$0x3]  ;;  %s5362_s7 = sld [smem:[#allocation34_spill]] }
 0x713   : > { %3930 = vmatprep.subr.bf16.mxu1 %v4447_v0  ;;  %3776 = vmatprep.mubr.msk.f32.mxu1 %vm4448_vm1, %v4449_v1 }
 0x715   : > { %3926 = vmatpush3.bf16.msra.mxu0 %v4926_v25 }
 0x716   : > { %3933 = vmatprep.subr.bf16.mxu0 %v4447_v0  ;;  %3932 = vmatpush3.bf16.msra.mxu1 %v4884_v12  ;;  %v3376_v12 = vld [vmem:[%s3116_s8 + $0xc] sm:$0x3] }
 0x717   : > { %3939 = vmatprep.subr.bf16.mxu1 %v4447_v0 }
 0x718   : > { %3766 = vmatmul.mubr.msk.f32.vlgmr.msra.gmra.mrb[20].mxu0 %vm740_vm2, %v2303_v9  ;;  %s5218_s8 = scalar_lea.hbm %s5362_s7, %s3416_s1 }
 0x719   : > { %3935 = vmatpush3.bf16.msra.mxu0 %v4886_v13  ;;  %3787 = vmatprep.mubr.msk.f32.mxu0 %vm4448_vm1, %v4449_v1 }
 0x71a   : > { %3936 = vmatprep.subr.bf16.mxu0 %v4447_v0 }
 0x71d   : > { %3938 = vmatpush3.bf16.msra.mxu0 %v4895_v17 }
 0x7e3   : > { %v2387_v11 = vpop.f32.mrb[18].mxu0  ;;  %v2464_v14 = vpop.f32.mrb[18].mxu1 }
 0x7e4   : > { %v2391_v15 = vadd.f32 %v3374_v6, %v2387_v11  ;;  %v3745_v16 = vpop.f32.mrb[19].mxu0  ;;  %v3756_v18 = vpop.f32.mrb[19].mxu1  ;;  %v2468_v13 = vadd.f32 %v3376_v12, %v2464_v14 }
 0x7e6   : > { %v3382_v19 = vmul.f32 -1.442695, %v2391_v15  ;;  %v3384_v21 = vmul.f32 -1.442695, %v2468_v13 }
 0x7e8   : > { %4109 = vpow2.f32 %v3382_v19 }
 0x7e9   : > { %4111 = vpow2.f32 %v3384_v21 }
 0x7eb   : > { %v2541_v22 = vpop.f32.mrb[20].mxu0 }
 0x7ec   : > { %v3767_v23 = vpop.f32.mrb[21].mxu0  ;;  %v2542_v28 = vadd.f32 %v4989_v53, %v2541_v22 }
 0x7f2   : > { %v4110_v24 = vpop.eup %4109 }
 0x7f3   : > { %v2395_v17 = vadd.f32 1.0, %v4110_v24  ;;  %v4112_v26 = vpop.eup %4111 }
 0x7f4   : > { %v2472_v27 = vadd.f32 1.0, %v4112_v26 }
 0x7f5   : > { %4113 = vrcp.f32 %v2395_v17 }
 0x7f6   : > { %4115 = vrcp.f32 %v2472_v27 }
 0x7ff   : > { %v4114_v29 = vpop.eup %4113 }
 0x800   : > { %v2545_v31 = vmul.f32 %v4114_v29, %v2542_v28  ;;  %v4116_v33 = vpop.eup %4115 }
 0x801   : > { %v2548_v34 = vsub.f32 1.0, %v4116_v33  ;;  %v2550_v36 = vmul.f32 %v4116_v33, %v2303_v9  ;;  %v2824_v9 = vpop.permute.xlu1 %2823 }
 0x802   : > { %v2546_v32 = vadd.f32 %v3378_v30, %v2545_v31 }
 0x804   : > { %4117 = vtanh.f32 %v2546_v32 }
 0x80e   : > { %v4118_v35 = vpop.eup %4117 }
 0x80f   : > { %v2549_v37 = vmul.f32 %v4118_v35, %v2548_v34 }
 0x811   : > { %v2551_v38 = vadd.f32 %v2550_v36, %v2549_v37 }
 0x813   : > { %v2557_v41 = vmul.f32 %v2555_v39, %v2551_v38 }
 0x815   : > { %v2565_v43 = vadd.f32 %v2564_v42, %v2557_v41 }
 0x817   : > { %v2566_v44 = vmul.f32 %v2565_v43, %v2555_v39  ;;  %3777 = vmatmul.mubr.msk.f32.vlgmr.msra.gmra.mrb[20].mxu1 %vm740_vm2, %v2565_v43  ;;  %3788 = vmatmul.mubr.msk.f32.vlgmr.msra.gmra.mrb[22].mxu0 %vm740_vm2, %v2565_v43  ;;  %v2826_v10 = vmul.f32 %v2824_v9, %v2565_v43 }
 0x818   : > { %3941 = vmatpush3.bf16.msra.mxu1 %v4901_v20  ;;  %3798 = vmatprep.mubr.msk.f32.mxu1 %vm4448_vm1, %v4449_v1  ;;  %v3391_v20 = vld [vmem:[%s3136_s28 + $0xe] sm:$0x3] }
 0x819   : > { %3387 = vst.msk [vmem:[%s3128_s9 + $0xc] sm:$0x3] %vm714_vm0, %v2566_v44  ;;  %3942 = vmatprep.subr.bf16.mxu1 %v4447_v0  ;;  %s4451_s9 = smov [#allocation15]  }
 0x81a   : > { %s4313_s29 = sshll.u32 %s4451_s9, 4  ;;  %s4314_s29 = int_to_ptr.vmem [resolvable:$false] %s4313_s29 }
 0x81b   : > { %s4315_s28 = scalar_lea.vmem %s4314_s29, 64  ;;  %p4316_p1 = scmp.lt.s32.totalorder %s5213_s25, %s4314_s29 }
 0x81c   : > { %3944 = vmatpush3.bf16.msra.mxu1 %v4926_v25  ;;  %p4317_p13 = scmp.lt.s32.totalorder %s4315_s28, %s4309_s30 }
 0x81e   : > { %p4318_p11 = por %p4317_p13, %p4316_p1 }
 0x81f   : > { %3799 = vmatmul.mubr.msk.f32.vlgmr.msra.gmra.mrb[22].mxu1 %vm740_vm2, %v2565_v43 }
 0x820   : > { %p4319_p6 = pnand %p4318_p11, %p4312_p8 }
 0x8ea   : > { %v2649_v46 = vpop.f32.mrb[20].mxu1  ;;  %v2726_v47 = vpop.f32.mrb[22].mxu0 }
 0x8eb   : > { %v2653_v48 = vadd.f32 %v3389_v45, %v2649_v46  ;;  %v3778_v49 = vpop.f32.mrb[21].mxu1  ;;  %v3789_v50 = vpop.f32.mrb[23].mxu0  ;;  %v2730_v51 = vadd.f32 %v3391_v20, %v2726_v47 }
 0x8ed   : > { %v3397_v1 = vmul.f32 -1.442695, %v2653_v48  ;;  %v3399_v52 = vmul.f32 -1.442695, %v2730_v51 }
 0x8ef   : > { %4119 = vpow2.f32 %v3397_v1 }
 0x8f0   : > { %4121 = vpow2.f32 %v3399_v52 }
 0x8f2   : > { %v2803_v0 = vpop.f32.mrb[22].mxu1 }
 0x8f3   : > { %v3800_v54 = vpop.f32.mrb[23].mxu1  ;;  %v2804_v58 = vadd.f32 %v4989_v53, %v2803_v0 }
 0x8f9   : > { %v4120_v25 = vpop.eup %4119 }
 0x8fa   : > { %v2657_v55 = vadd.f32 1.0, %v4120_v25  ;;  %v4122_v56 = vpop.eup %4121 }
 0x8fb   : > { %v2734_v57 = vadd.f32 1.0, %v4122_v56 }
 0x8fc   : > { %4123 = vrcp.f32 %v2657_v55 }
 0x8fd   : > { %4125 = vrcp.f32 %v2734_v57 }
 0x906   : > { %v4124_v59 = vpop.eup %4123 }
 0x907   : > { %v2807_v61 = vmul.f32 %v4124_v59, %v2804_v58  ;;  %v4126_v63 = vpop.eup %4125 }
 0x908   : > { %v2810_v2 = vsub.f32 1.0, %v4126_v63  ;;  %v2812_v4 = vmul.f32 %v4126_v63, %v2565_v43 }
 0x909   : > { %v2808_v62 = vadd.f32 %v3393_v60, %v2807_v61 }
 0x90b   : > { %4127 = vtanh.f32 %v2808_v62 }
 0x915   : > { %v4128_v3 = vpop.eup %4127 }
 0x916   : > { %v2811_v5 = vmul.f32 %v4128_v3, %v2810_v2 }
 0x918   : > { %v2813_v7 = vadd.f32 %v2812_v4, %v2811_v5 }
 0x91a   : > { %v2819_v53 = vmul.f32 %v2817_v8, %v2813_v7 }
 0x91c   : > { %v2827_v6 = vadd.f32 %v2826_v10, %v2819_v53 }
 0x91e   : > { %v2828_v11 = vmul.f32 %v2827_v6, %v2817_v8  ;;  %2831 = vst.msk [vmem:[#allocation2] sm:$0x3] %vm714_vm0, %v2827_v6  ;;  %2835 = vst.msk [vmem:[%s672_s0] sm:$0x3] %vm714_vm0, %v2827_v6 }
 0x91f   : > { %4322 = shalt.err (!%p4319_p6)
}
 0x920   : > { %s4323_s27 = scalar_lea.hbm %s5211_s21, 32  ;;  %s4327_s0 = scalar_lea.hbm %s5361_s17, 64 }
 0x921   : > { %p4324_p2 = scmp.ne.s32.totalorder %s5211_s21, %s4323_s27  ;;  %p4328_p4 = scmp.lt.u32.totalorder %s5211_s21, %s5361_s17 }
 0x922   : > { %p4329_p5 = scmp.lt.u32.totalorder %s4327_s0, %s4323_s27  ;;  %p4331_p10 = scmp.lt.u32.totalorder %s4323_s27, %s5211_s21 }
 0x923   : > { %p4325_p7 = pnand %p4324_p2, %p5363_p9 }
 0x924   : > { %p4330_p0 = por %p4329_p5, %p4328_p4 }
 0x925   : > { %p4326_p3 = pneg %p4325_p7 }
 0x926   : > { %p4332_p12 = por %p4331_p10, %p4330_p0 }
 0x928   : > { %p4333_p8 = pnand %p4332_p12, %p4326_p3 }
 0x92a   : > { %4336 = shalt.err (!%p4333_p8)
}
 0x92b   : > { %3958 = dma.vmem_to_hbm [thread:$0]  (%p5363_p9), %s5213_s25, 32, %s5211_s21, %s2842_s12   ;;  %3402 = vst.msk [vmem:[%s3148_s18 + $0xe] sm:$0x3] %vm714_vm0, %v2828_v11 }
 0x92c   : > { %s2837_s23 = scalar_lea.sflag [#allocation5], %s4830_s16  ;;  %s4337_s13 = scalar_lea.vmem %s5220_s20, 256 }
 0x92d   : > { %p4338_p1 = scmp.ne.s32.totalorder %s5220_s20, %s4337_s13  ;;  %s4452_s11 = smov [#allocation14]  }
 0x92e   : > { %s4341_s30 = sshll.u32 %s4452_s11, 4  ;;  %s4342_s30 = int_to_ptr.vmem [resolvable:$false] %s4341_s30 }
 0x92f   : > { %p4339_p13 = pnand %p4338_p1, %p5363_p9  ;;  %s4343_s9 = scalar_lea.vmem %s4342_s30, 512 }
 0x930   : > { %p4344_p6 = scmp.lt.s32.totalorder %s5220_s20, %s4342_s30  ;;  %p4345_p2 = scmp.lt.s32.totalorder %s4343_s9, %s4337_s13 }
 0x931   : > { %p4340_p11 = pneg %p4339_p13 }
 0x932   : > { %p4346_p7 = por %p4345_p2, %p4344_p6 }
 0x934   : > { %p4347_p3 = pnand %p4346_p7, %p4340_p11 }
 0x936   : > { %4350 = shalt.err (!%p4347_p3)
}
 0x937   : > { %s4351_s19 = scalar_lea.hbm %s5218_s8, 256  ;;  %s4355_s25 = scalar_lea.hbm %s5362_s7, 512 }
 0x938   : > { %p4352_p4 = scmp.ne.s32.totalorder %s5218_s8, %s4351_s19  ;;  %p4356_p10 = scmp.lt.u32.totalorder %s5218_s8, %s5362_s7 }
 0x939   : > { %p4357_p12 = scmp.lt.u32.totalorder %s4355_s25, %s4351_s19  ;;  %p4359_p1 = scmp.lt.u32.totalorder %s4351_s19, %s5218_s8 }
 0x93a   : > { %p4353_p5 = pnand %p4352_p4, %p5363_p9 }
 0x93b   : > { %p4358_p8 = por %p4357_p12, %p4356_p10 }
 0x93c   : > { %p4354_p0 = pneg %p4353_p5 }
 0x93d   : > { %p4360_p13 = por %p4359_p1, %p4358_p8 }
 0x93f   : > { %p4361_p11 = pnand %p4360_p13, %p4354_p0 }
 0x941   : > { %4364 = shalt.err (!%p4361_p11)
}
 0x942   : > { %s4453_s29 = smov 32   ;;  %s4454_s28 = smov 2  }
 0x943   : > { %3957 = dma.vmem_to_hbm [thread:$0]  (%p5363_p9), %s5220_s20, 256, %s5218_s8, %s2837_s23, %s4453_s29, %s4453_s29, %s4454_s28  }
 0x944 PF: > { %s5364_s27 = sld [smem:[#allocation23_spill]]  ;;  %s5365_s22 = sld [smem:[#allocation29_spill]] }
 0x945   : > { %p5367_p2 = scmp.ge.s32.totalorder %s4435_s14, 2 }
 0x94a   : > { %s2889_s26 = sand.u32 1, %s5364_s27   ;;  %p5366_p6 = scmp.ne.s32.totalorder %s5365_s22, 0 }
 0x94b   : > { %s2890_s0 = scalar_lea.sflag [#allocation5], %s2889_s26 }
 0x94c   : > { %p3981_p7 = pnand %p5367_p2, %p5366_p6 }
 0x94e   : > { %4406 = dma.done.wait (!%p3981_p7), %s2890_s0, 256  }
 0x94f   : > { %4408 = vsyncadd (!%p3981_p7), %s2890_s0, 4294967040  ;;  %s2899_s1 = scalar_lea.sflag [#allocation16], %s2889_s26 }
 0x950   : > { %4410 = dma.done.wait (!%p3981_p7), %s2899_s1, 32  }
 0x951   : > { %4412 = vsyncadd (!%p3981_p7), %s2899_s1, 4294967264  ;;  %s38_s14 = sadd.s32 1, %s4435_s14   ;;  %s5368_s16 = sld [smem:[#allocation24_spill]] }
 0x952   : > { %p35_p3 = scmp.ge.s32.totalorder %s38_s14, 4   ;;  %s5369_s11 = sld [smem:[#allocation28_spill]] }
 0x953   : > { %s5370_s12 = sld [smem:[#allocation25_spill]]  ;;  %s5371_s13 = sld [smem:[#allocation26_spill]] }
 0x954   : > { %s5372_s30 = smov %s4419_s10  ;;  %37 = sbr.rel (!%p35_p3) target bundleno = 21 (0x15), region = 229 }
 0x957   : > { %s5373_s10 = smov %s5368_s16 }
 0x95b   :  { %2904 = vsyncpa [#allocation4], 1 }
 0x95c   :  { %2906 = vsyncpa [#allocation4 + $0x1], 1 }
 0x95d   :  { %2907 = vsyncpa [#allocation7], 1 }
 0x95e   :  { %2909 = vsyncpa [#allocation7 + $0x1], 1 }
 0x95f   :  { %2910 = vsyncpa [#allocation10], 1 }
 0x960   :  { %2912 = vsyncpa [#allocation10 + $0x1], 1 }
 0x961   :  { %2913 = vsyncpa [#allocation13], 1 }
 0x962   :  { %2915 = vsyncpa [#allocation13 + $0x1], 1 }
 0x963   :  { %2916 = vsyncpa [#allocation5], 1 }
 0x964   :  { %2918 = vsyncpa [#allocation5 + $0x1], 1 }
 0x965   :  { %2919 = vsyncpa [#allocation16], 1 }
 0x966   :  { %2921 = vsyncpa [#allocation16 + $0x1], 1 }

</bundles_post_ra>
